<compile_context>
chip_gen: v6e
topology: v6e:2x2x1
jax: 0.10.0
libtpu: 0.0.40
codegen_flags: <defaults>
</compile_context>

<pallas_src>
import functools

import jax
import jax.numpy as jnp
from jax.experimental import pallas as pl
from jax.experimental.pallas import tpu as pltpu


def _round_up(x, m):
    return ((x + m - 1) // m) * m


def _fold_conv_bn(w_oihw, gamma, beta, running_mean, running_var, eps):
    """Fold eval-mode BatchNorm into HWIO conv weights + a per-channel bias (f32)."""
    w_hwio = jnp.transpose(w_oihw, (2, 3, 1, 0)).astype(jnp.float32)  # (kh, kw, Cin, Cout)
    inv_std = jax.lax.rsqrt(running_var.astype(jnp.float32) + eps)
    scale = gamma.astype(jnp.float32) * inv_std
    bias = beta.astype(jnp.float32) - running_mean.astype(jnp.float32) * scale
    return w_hwio * scale[None, None, None, :], bias


def _pick_row_tile(H, W, cin, cout_p, budget_bytes=4 * 1024 * 1024):
    """Largest divisor of H whose per-step working set fits a conservative budget
    (sized so double-buffered blocks stay far below v7x's 64 MiB VMEM per core)."""
    best = 1
    for th in range(1, H + 1):
        if H % th:
            continue
        halo = (th + 2) * (W + 2) * cin * 2        # bf16 padded input tile
        acc = th * W * cout_p * 4                  # f32 accumulator scratch
        out_blk = 2 * th * W * cout_p * 4          # double-buffered f32 output block
        if halo + acc + out_blk <= budget_bytes:
            best = th
    return best


def _convblock_kernel(x_ref, w_ref, b_ref, o_ref, xpad_ref, acc_ref):
    # x_ref:    (1, H, W, Cin)       bf16 full (unpadded) image for this batch element
    # w_ref:    (9, Cin, Cout_p)     bf16 BN-scale-folded conv taps ((kh*3+kw) major)
    # b_ref:    (1, Cout_p)          f32 folded BN bias
    # o_ref:    (1, TH, W, Cout_p)   f32 output row tile (lane-dense last dim)
    # xpad_ref: (TH+2, W+2, Cin)     bf16 scratch: zero-padded halo tile
    # acc_ref:  (TH*W, Cout_p)       f32 scratch accumulator
    TH = o_ref.shape[1]
    W = o_ref.shape[2]
    Cin = x_ref.shape[3]

    r = pl.program_id(1)
    n_rt = pl.num_programs(1)
    row0 = r * TH  # first output row of this tile

    # ---- stage the zero-padded halo tile in VMEM (no jnp.pad / extra HBM pass) ----
    xpad_ref[...] = jnp.zeros_like(xpad_ref)
    xpad_ref[1:TH + 1, 1:W + 1, :] = x_ref[0, pl.ds(row0, TH), :, :]

    @pl.when(r > 0)
    def _top_halo():
        xpad_ref[0, 1:W + 1, :] = x_ref[0, row0 - 1, :, :]

    @pl.when(r < n_rt - 1)
    def _bottom_halo():
        xpad_ref[TH + 1, 1:W + 1, :] = x_ref[0, row0 + TH, :, :]

    # ---- 3x3 conv = 9 shifted bf16 matmuls on the MXU, f32 VMEM accumulator ----
    # Cout_p is a multiple of 128, so the MXU N dim and every store are lane-dense.
    # TODO(synk): for small Cin a full im2col (K=9*Cin, one MXU call) would be even
    # better, but lane-dim concatenation of Cin=4 slices is an unaligned-relayout
    # path; keep 9 matmuls accumulating into VMEM instead.
    for t in range(9):
        dh, dw = divmod(t, 3)
        patch = xpad_ref[dh:dh + TH, dw:dw + W, :].reshape(TH * W, Cin)
        contrib = jnp.dot(patch, w_ref[t], preferred_element_type=jnp.float32)
        if t == 0:
            acc_ref[...] = contrib
        else:
            acc_ref[...] += contrib

    # ---- epilogue (f32): folded-BN bias + LeakyReLU(0.1), lane-dense store ----
    y = acc_ref[...] + b_ref[0]
    y = jnp.where(y >= 0.0, y, 0.1 * y)
    o_ref[0] = y.reshape(TH, W, o_ref.shape[3]).astype(o_ref.dtype)


def _conv_block_pallas(x_nhwc_bf16, w_k, bias_p, row_tile):
    N, H, W, Cin = x_nhwc_bf16.shape
    _, _, cout_p = w_k.shape
    th = row_tile if row_tile is not None else _pick_row_tile(H, W, Cin, cout_p)
    if H % th != 0:
        raise ValueError(f"row_tile={th} must divide H={H}")
    n_rt = H // th

    return pl.pallas_call(
        _convblock_kernel,
        out_shape=jax.ShapeDtypeStruct((N, H, W, cout_p), jnp.float32),
        grid_spec=pltpu.PrefetchScalarGridSpec(
            num_scalar_prefetch=0,
            grid=(N, n_rt),
            in_specs=[
                # full image per batch element; resident across the row-tile axis.
                pl.BlockSpec((1, H, W, Cin), lambda b, r: (b, 0, 0, 0)),
                pl.BlockSpec((9, Cin, cout_p), lambda b, r: (0, 0, 0)),
                pl.BlockSpec((1, cout_p), lambda b, r: (0, 0)),
            ],
            out_specs=pl.BlockSpec((1, th, W, cout_p), lambda b, r: (b, r, 0, 0)),
            scratch_shapes=[
                pltpu.VMEM((th + 2, W + 2, Cin), jnp.bfloat16),  # padded halo tile
                pltpu.VMEM((th * W, cout_p), jnp.float32),       # f32 accumulator
            ],
        ),
        compiler_params=pltpu.CompilerParams(
            dimension_semantics=("parallel", "parallel"),
            # stay well under v7x's 64 MiB physical VMEM per TensorCore
            vmem_limit_bytes=48 * 1024 * 1024,
        ),
    )(x_nhwc_bf16, w_k, bias_p)


def conv_block_nchw(x_nchw, w_oihw, gamma, beta, running_mean, running_var,
                    eps=1e-5, row_tile=None):
    """Matches ConvBlock(ni, nf, size=3, stride=1).forward with eval-mode BatchNorm.

    x_nchw: (N, Cin, H, W) like PyTorch; returns (N, Cout, H, W).
    """
    N, Cin, H, W = x_nchw.shape
    Cout = w_oihw.shape[0]
    cout_p = _round_up(Cout, 128)

    # NCHW -> NHWC once + bf16 cast (single fused XLA pass around the Pallas hot path).
    # TODO(synk): in a full network keep activations NHWC end-to-end and convert the
    # weights once at load time so these transposes disappear from the hot path.
    x_nhwc = jnp.transpose(x_nchw, (0, 2, 3, 1)).astype(jnp.bfloat16)

    # Fold BN scale into conv weights; pad Cout to a lane-dense multiple of 128.
    w_folded, bias = _fold_conv_bn(w_oihw, gamma, beta, running_mean, running_var, eps)
    w_k = jnp.pad(w_folded, ((0, 0), (0, 0), (0, 0), (0, cout_p - Cout)))
    w_k = w_k.reshape(9, Cin, cout_p).astype(jnp.bfloat16)
    bias_p = jnp.pad(bias, (0, cout_p - Cout)).reshape(1, cout_p).astype(jnp.float32)

    y_nhwc = _conv_block_pallas(x_nhwc, w_k, bias_p, row_tile)
    return jnp.transpose(y_nhwc[..., :Cout], (0, 3, 1, 2)).astype(x_nchw.dtype)


# ---------------------------- references for testing ----------------------------

def _reference_f32(x_nchw, w_oihw, gamma, beta, running_mean, running_var, eps=1e-5):
    """Faithful f32 reference of the PyTorch module (eval-mode BN)."""
    y = jax.lax.conv_general_dilated(
        x_nchw, w_oihw, window_strides=(1, 1), padding=((1, 1), (1, 1)),
        dimension_numbers=("NCHW", "OIHW", "NCHW"))
    inv_std = 1.0 / jnp.sqrt(running_var + eps)
    scale = (gamma * inv_std).reshape(1, -1, 1, 1)
    bias = (beta - running_mean * gamma * inv_std).reshape(1, -1, 1, 1)
    y = y * scale + bias
    return jnp.where(y >= 0.0, y, 0.1 * y)


def _reference_bf16_consistent(x_nchw, w_oihw, gamma, beta, running_mean,
                               running_var, eps=1e-5):
    """Reference using the kernel's quantization (bf16 x, folded bf16 w, f32 math)."""
    w_folded, bias = _fold_conv_bn(w_oihw, gamma, beta, running_mean, running_var, eps)
    w_bf = w_folded.astype(jnp.bfloat16).astype(jnp.float32)          # (3,3,Cin,Cout)
    x_nhwc = jnp.transpose(x_nchw, (0, 2, 3, 1)).astype(jnp.bfloat16).astype(jnp.float32)
    y = jax.lax.conv_general_dilated(
        x_nhwc, w_bf, window_strides=(1, 1), padding=((1, 1), (1, 1)),
        dimension_numbers=("NHWC", "HWIO", "NHWC"))
    y = y + bias.reshape(1, 1, 1, -1)
    y = jnp.where(y >= 0.0, y, 0.1 * y)
    return jnp.transpose(y, (0, 3, 1, 2))


if __name__ == "__main__":
    key = jax.random.PRNGKey(0)
    N, Cin, Cout, H, W = 2, 4, 8, 16, 16

    k_x, k_w, k_g, k_b, k_m, k_v = jax.random.split(key, 6)
    x = jax.random.normal(k_x, (N, Cin, H, W), dtype=jnp.float32)
    # Conv2d weight, PyTorch (Cout, Cin, 3, 3) order.
    w = jax.random.normal(k_w, (Cout, Cin, 3, 3), dtype=jnp.float32) * 0.1
    # Deterministic non-trivial BatchNorm parameters / running stats.
    gamma = 1.0 + 0.1 * jax.random.normal(k_g, (Cout,), dtype=jnp.float32)
    beta = 0.1 * jax.random.normal(k_b, (Cout,), dtype=jnp.float32)
    running_mean = 0.1 * jax.random.normal(k_m, (Cout,), dtype=jnp.float32)
    running_var = jnp.abs(1.0 + 0.1 * jax.random.normal(
        k_v, (Cout,), dtype=jnp.float32))

    ref_strict = _reference_bf16_consistent(x, w, gamma, beta, running_mean, running_var)
    ref_f32 = _reference_f32(x, w, gamma, beta, running_mean, running_var)

    # row_tile=8 exercises the multi-tile in-kernel halo path; None uses the auto tile.
    for row_tile in (8, None):
        fn = jax.jit(functools.partial(conv_block_nchw, row_tile=row_tile))
        out = jax.block_until_ready(fn(x, w, gamma, beta, running_mean, running_var))
        assert out.shape == (N, Cout, H, W)
        # strict: same bf16-quantized operands, f32 accumulation -> tight tolerance
        assert jnp.max(jnp.abs(out - ref_strict)) < 1e-3
        # loose: vs. the exact f32 PyTorch-semantics reference (bf16 quantization noise)
        assert jnp.max(jnp.abs(out - ref_f32)) < 5e-2

    print("KERNEL_OK")
</pallas_src>

<mosaic_0001>
module attributes {stable_mosaic.version = 11 : i64} {
  func.func @_convblock_kernel(%arg0: i32, %arg1: i32, %arg2: memref<1x16x16x4xbf16, #tpu.memory_space<vmem>>, %arg3: memref<9x4x128xbf16, #tpu.memory_space<vmem>>, %arg4: memref<1x128xf32, #tpu.memory_space<vmem>>, %arg5: memref<1x8x16x128xf32, #tpu.memory_space<vmem>>, %arg6: memref<10x18x4xbf16, #tpu.memory_space<vmem>>, %arg7: memref<128x128xf32, #tpu.memory_space<vmem>>) attributes {dimension_semantics = [#tpu.dimension_semantics<parallel>, #tpu.dimension_semantics<parallel>], iteration_bounds = array<i64: 2, 2>, scalar_prefetch = 0 : i64, scratch_operands = 2 : i64, tpu.core_type = #tpu.core_type<tc>, window_params = [{transform_indices = @transform_0, window_bounds = array<i64: 1, 16, 16, 4>}, {pipeline_mode = #tpu.pipeline_mode<synchronous>, transform_indices = @transform_1, window_bounds = array<i64: 9, 4, 128>}, {pipeline_mode = #tpu.pipeline_mode<synchronous>, transform_indices = @transform_2, window_bounds = array<i64: 1, 128>}, {transform_indices = @transform_3, window_bounds = array<i64: 1, 8, 16, 128>}]} {
    %c8_i32 = arith.constant 8 : i32
    %0 = arith.muli %arg1, %c8_i32 : i32
    %cst = arith.constant 0.000000e+00 : bf16
    %1 = vector.broadcast %cst : bf16 to vector<10x18x4xbf16>
    %c0 = arith.constant 0 : index
    %c0_0 = arith.constant 0 : index
    %c0_1 = arith.constant 0 : index
    %2 = vector.load %arg6[%c0, %c0_0, %c0_1] : memref<10x18x4xbf16, #tpu.memory_space<vmem>>, vector<10x18x4xbf16>
    tpu.vector_store %arg6[%c0, %c0_0, %c0_1], %1 {strides = array<i32>} : memref<10x18x4xbf16, #tpu.memory_space<vmem>>, vector<10x18x4xbf16>,
    %c0_2 = arith.constant 0 : index
    %3 = arith.index_cast %0 : i32 to index
    %c0_3 = arith.constant 0 : index
    %c0_4 = arith.constant 0 : index
    %4 = vector.load %arg2[%c0_2, %3, %c0_3, %c0_4] : memref<1x16x16x4xbf16, #tpu.memory_space<vmem>>, vector<1x8x16x4xbf16>
    %5 = vector.shape_cast %4 : vector<1x8x16x4xbf16> to vector<8x16x4xbf16>
    %c1 = arith.constant 1 : index
    %c1_5 = arith.constant 1 : index
    %c0_6 = arith.constant 0 : index
    %6 = vector.load %arg6[%c1, %c1_5, %c0_6] : memref<10x18x4xbf16, #tpu.memory_space<vmem>>, vector<8x16x4xbf16>
    tpu.vector_store %arg6[%c1, %c1_5, %c0_6], %5 {strides = array<i32>} : memref<10x18x4xbf16, #tpu.memory_space<vmem>>, vector<8x16x4xbf16>,
    %c0_i32 = arith.constant 0 : i32
    %7 = arith.cmpi sgt, %arg1, %c0_i32 : i32
    %8 = arith.extui %7 : i1 to i32
    %c0_i32_7 = arith.constant 0 : i32
    %9 = arith.cmpi ne, %8, %c0_i32_7 : i32
    scf.if %9 {
      %c1_i32_109 = arith.constant 1 : i32
      %98 = arith.subi %0, %c1_i32_109 : i32
      %c0_110 = arith.constant 0 : index
      %99 = arith.index_cast %98 : i32 to index
      %c0_111 = arith.constant 0 : index
      %c0_112 = arith.constant 0 : index
      %100 = vector.load %arg2[%c0_110, %99, %c0_111, %c0_112] : memref<1x16x16x4xbf16, #tpu.memory_space<vmem>>, vector<1x1x16x4xbf16>
      %101 = vector.shape_cast %100 : vector<1x1x16x4xbf16> to vector<16x4xbf16>
      %c0_113 = arith.constant 0 : index
      %c1_114 = arith.constant 1 : index
      %c0_115 = arith.constant 0 : index
      %102 = vector.load %arg6[%c0_113, %c1_114, %c0_115] : memref<10x18x4xbf16, #tpu.memory_space<vmem>>, vector<1x16x4xbf16>
      %103 = vector.shape_cast %102 : vector<1x16x4xbf16> to vector<16x4xbf16>
      %104 = vector.shape_cast %101 : vector<16x4xbf16> to vector<1x16x4xbf16>
      tpu.vector_store %arg6[%c0_113, %c1_114, %c0_115], %104 {strides = array<i32>} : memref<10x18x4xbf16, #tpu.memory_space<vmem>>, vector<1x16x4xbf16>,
    } else {
    }
    %c1_i32 = arith.constant 1 : i32
    %10 = arith.cmpi slt, %arg1, %c1_i32 : i32
    %11 = arith.extui %10 : i1 to i32
    %c0_i32_8 = arith.constant 0 : i32
    %12 = arith.cmpi ne, %11, %c0_i32_8 : i32
    scf.if %12 {
      %c8_i32_109 = arith.constant 8 : i32
      %98 = arith.addi %0, %c8_i32_109 : i32
      %c0_110 = arith.constant 0 : index
      %99 = arith.index_cast %98 : i32 to index
      %c0_111 = arith.constant 0 : index
      %c0_112 = arith.constant 0 : index
      %100 = vector.load %arg2[%c0_110, %99, %c0_111, %c0_112] : memref<1x16x16x4xbf16, #tpu.memory_space<vmem>>, vector<1x1x16x4xbf16>
      %101 = vector.shape_cast %100 : vector<1x1x16x4xbf16> to vector<16x4xbf16>
      %c9 = arith.constant 9 : index
      %c1_113 = arith.constant 1 : index
      %c0_114 = arith.constant 0 : index
      %102 = vector.load %arg6[%c9, %c1_113, %c0_114] : memref<10x18x4xbf16, #tpu.memory_space<vmem>>, vector<1x16x4xbf16>
      %103 = vector.shape_cast %102 : vector<1x16x4xbf16> to vector<16x4xbf16>
      %104 = vector.shape_cast %101 : vector<16x4xbf16> to vector<1x16x4xbf16>
      tpu.vector_store %arg6[%c9, %c1_113, %c0_114], %104 {strides = array<i32>} : memref<10x18x4xbf16, #tpu.memory_space<vmem>>, vector<1x16x4xbf16>,
    } else {
    }
    %c0_9 = arith.constant 0 : index
    %c0_10 = arith.constant 0 : index
    %c0_11 = arith.constant 0 : index
    %13 = vector.load %arg6[%c0_9, %c0_10, %c0_11] : memref<10x18x4xbf16, #tpu.memory_space<vmem>>, vector<8x16x4xbf16>
    %14 = vector.shape_cast %13 : vector<8x16x4xbf16> to vector<128x4xbf16>
    %c0_12 = arith.constant 0 : index
    %c0_13 = arith.constant 0 : index
    %c0_14 = arith.constant 0 : index
    %15 = vector.load %arg3[%c0_12, %c0_13, %c0_14] : memref<9x4x128xbf16, #tpu.memory_space<vmem>>, vector<1x4x128xbf16>
    %16 = vector.shape_cast %15 : vector<1x4x128xbf16> to vector<4x128xbf16>
    %cst_15 = arith.constant dense<0.000000e+00> : vector<128x128xf32>
    %17 = tpu.matmul %14, %16, %cst_15 {dimension_numbers = #tpu.dot_dimension_numbers<[1], [0], [0], [1], [0, 0, 1, 1], [], []>} : vector<128x4xbf16>, vector<4x128xbf16>, vector<128x128xf32> -> vector<128x128xf32>
    %c0_16 = arith.constant 0 : index
    %c0_17 = arith.constant 0 : index
    %18 = vector.load %arg7[%c0_16, %c0_17] : memref<128x128xf32, #tpu.memory_space<vmem>>, vector<128x128xf32>
    tpu.vector_store %arg7[%c0_16, %c0_17], %17 {strides = array<i32>} : memref<128x128xf32, #tpu.memory_space<vmem>>, vector<128x128xf32>,
    %c0_18 = arith.constant 0 : index
    %c1_19 = arith.constant 1 : index
    %c0_20 = arith.constant 0 : index
    %19 = vector.load %arg6[%c0_18, %c1_19, %c0_20] : memref<10x18x4xbf16, #tpu.memory_space<vmem>>, vector<8x16x4xbf16>
    %20 = vector.shape_cast %19 : vector<8x16x4xbf16> to vector<128x4xbf16>
    %c1_21 = arith.constant 1 : index
    %c0_22 = arith.constant 0 : index
    %c0_23 = arith.constant 0 : index
    %21 = vector.load %arg3[%c1_21, %c0_22, %c0_23] : memref<9x4x128xbf16, #tpu.memory_space<vmem>>, vector<1x4x128xbf16>
    %22 = vector.shape_cast %21 : vector<1x4x128xbf16> to vector<4x128xbf16>
    %cst_24 = arith.constant dense<0.000000e+00> : vector<128x128xf32>
    %23 = tpu.matmul %20, %22, %cst_24 {dimension_numbers = #tpu.dot_dimension_numbers<[1], [0], [0], [1], [0, 0, 1, 1], [], []>} : vector<128x4xbf16>, vector<4x128xbf16>, vector<128x128xf32> -> vector<128x128xf32>
    %c0_25 = arith.constant 0 : index
    %c0_26 = arith.constant 0 : index
    %24 = vector.load %arg7[%c0_25, %c0_26] : memref<128x128xf32, #tpu.memory_space<vmem>>, vector<128x128xf32>
    %25 = arith.addf %24, %23 : vector<128x128xf32>
    %c0_27 = arith.constant 0 : index
    %c0_28 = arith.constant 0 : index
    %26 = vector.load %arg7[%c0_27, %c0_28] : memref<128x128xf32, #tpu.memory_space<vmem>>, vector<128x128xf32>
    tpu.vector_store %arg7[%c0_27, %c0_28], %25 {strides = array<i32>} : memref<128x128xf32, #tpu.memory_space<vmem>>, vector<128x128xf32>,
    %c0_29 = arith.constant 0 : index
    %c2 = arith.constant 2 : index
    %c0_30 = arith.constant 0 : index
    %27 = vector.load %arg6[%c0_29, %c2, %c0_30] : memref<10x18x4xbf16, #tpu.memory_space<vmem>>, vector<8x16x4xbf16>
    %28 = vector.shape_cast %27 : vector<8x16x4xbf16> to vector<128x4xbf16>
    %c2_31 = arith.constant 2 : index
    %c0_32 = arith.constant 0 : index
    %c0_33 = arith.constant 0 : index
    %29 = vector.load %arg3[%c2_31, %c0_32, %c0_33] : memref<9x4x128xbf16, #tpu.memory_space<vmem>>, vector<1x4x128xbf16>
    %30 = vector.shape_cast %29 : vector<1x4x128xbf16> to vector<4x128xbf16>
    %cst_34 = arith.constant dense<0.000000e+00> : vector<128x128xf32>
    %31 = tpu.matmul %28, %30, %cst_34 {dimension_numbers = #tpu.dot_dimension_numbers<[1], [0], [0], [1], [0, 0, 1, 1], [], []>} : vector<128x4xbf16>, vector<4x128xbf16>, vector<128x128xf32> -> vector<128x128xf32>
    %c0_35 = arith.constant 0 : index
    %c0_36 = arith.constant 0 : index
    %32 = vector.load %arg7[%c0_35, %c0_36] : memref<128x128xf32, #tpu.memory_space<vmem>>, vector<128x128xf32>
    %33 = arith.addf %32, %31 : vector<128x128xf32>
    %c0_37 = arith.constant 0 : index
    %c0_38 = arith.constant 0 : index
    %34 = vector.load %arg7[%c0_37, %c0_38] : memref<128x128xf32, #tpu.memory_space<vmem>>, vector<128x128xf32>
    tpu.vector_store %arg7[%c0_37, %c0_38], %33 {strides = array<i32>} : memref<128x128xf32, #tpu.memory_space<vmem>>, vector<128x128xf32>,
    %c1_39 = arith.constant 1 : index
    %c0_40 = arith.constant 0 : index
    %c0_41 = arith.constant 0 : index
    %35 = vector.load %arg6[%c1_39, %c0_40, %c0_41] : memref<10x18x4xbf16, #tpu.memory_space<vmem>>, vector<8x16x4xbf16>
    %36 = vector.shape_cast %35 : vector<8x16x4xbf16> to vector<128x4xbf16>
    %c3 = arith.constant 3 : index
    %c0_42 = arith.constant 0 : index
    %c0_43 = arith.constant 0 : index
    %37 = vector.load %arg3[%c3, %c0_42, %c0_43] : memref<9x4x128xbf16, #tpu.memory_space<vmem>>, vector<1x4x128xbf16>
    %38 = vector.shape_cast %37 : vector<1x4x128xbf16> to vector<4x128xbf16>
    %cst_44 = arith.constant dense<0.000000e+00> : vector<128x128xf32>
    %39 = tpu.matmul %36, %38, %cst_44 {dimension_numbers = #tpu.dot_dimension_numbers<[1], [0], [0], [1], [0, 0, 1, 1], [], []>} : vector<128x4xbf16>, vector<4x128xbf16>, vector<128x128xf32> -> vector<128x128xf32>
    %c0_45 = arith.constant 0 : index
    %c0_46 = arith.constant 0 : index
    %40 = vector.load %arg7[%c0_45, %c0_46] : memref<128x128xf32, #tpu.memory_space<vmem>>, vector<128x128xf32>
    %41 = arith.addf %40, %39 : vector<128x128xf32>
    %c0_47 = arith.constant 0 : index
    %c0_48 = arith.constant 0 : index
    %42 = vector.load %arg7[%c0_47, %c0_48] : memref<128x128xf32, #tpu.memory_space<vmem>>, vector<128x128xf32>
    tpu.vector_store %arg7[%c0_47, %c0_48], %41 {strides = array<i32>} : memref<128x128xf32, #tpu.memory_space<vmem>>, vector<128x128xf32>,
    %c1_49 = arith.constant 1 : index
    %c1_50 = arith.constant 1 : index
    %c0_51 = arith.constant 0 : index
    %43 = vector.load %arg6[%c1_49, %c1_50, %c0_51] : memref<10x18x4xbf16, #tpu.memory_space<vmem>>, vector<8x16x4xbf16>
    %44 = vector.shape_cast %43 : vector<8x16x4xbf16> to vector<128x4xbf16>
    %c4 = arith.constant 4 : index
    %c0_52 = arith.constant 0 : index
    %c0_53 = arith.constant 0 : index
    %45 = vector.load %arg3[%c4, %c0_52, %c0_53] : memref<9x4x128xbf16, #tpu.memory_space<vmem>>, vector<1x4x128xbf16>
    %46 = vector.shape_cast %45 : vector<1x4x128xbf16> to vector<4x128xbf16>
    %cst_54 = arith.constant dense<0.000000e+00> : vector<128x128xf32>
    %47 = tpu.matmul %44, %46, %cst_54 {dimension_numbers = #tpu.dot_dimension_numbers<[1], [0], [0], [1], [0, 0, 1, 1], [], []>} : vector<128x4xbf16>, vector<4x128xbf16>, vector<128x128xf32> -> vector<128x128xf32>
    %c0_55 = arith.constant 0 : index
    %c0_56 = arith.constant 0 : index
    %48 = vector.load %arg7[%c0_55, %c0_56] : memref<128x128xf32, #tpu.memory_space<vmem>>, vector<128x128xf32>
    %49 = arith.addf %48, %47 : vector<128x128xf32>
    %c0_57 = arith.constant 0 : index
    %c0_58 = arith.constant 0 : index
    %50 = vector.load %arg7[%c0_57, %c0_58] : memref<128x128xf32, #tpu.memory_space<vmem>>, vector<128x128xf32>
    tpu.vector_store %arg7[%c0_57, %c0_58], %49 {strides = array<i32>} : memref<128x128xf32, #tpu.memory_space<vmem>>, vector<128x128xf32>,
    %c1_59 = arith.constant 1 : index
    %c2_60 = arith.constant 2 : index
    %c0_61 = arith.constant 0 : index
    %51 = vector.load %arg6[%c1_59, %c2_60, %c0_61] : memref<10x18x4xbf16, #tpu.memory_space<vmem>>, vector<8x16x4xbf16>
    %52 = vector.shape_cast %51 : vector<8x16x4xbf16> to vector<128x4xbf16>
    %c5 = arith.constant 5 : index
    %c0_62 = arith.constant 0 : index
    %c0_63 = arith.constant 0 : index
    %53 = vector.load %arg3[%c5, %c0_62, %c0_63] : memref<9x4x128xbf16, #tpu.memory_space<vmem>>, vector<1x4x128xbf16>
    %54 = vector.shape_cast %53 : vector<1x4x128xbf16> to vector<4x128xbf16>
    %cst_64 = arith.constant dense<0.000000e+00> : vector<128x128xf32>
    %55 = tpu.matmul %52, %54, %cst_64 {dimension_numbers = #tpu.dot_dimension_numbers<[1], [0], [0], [1], [0, 0, 1, 1], [], []>} : vector<128x4xbf16>, vector<4x128xbf16>, vector<128x128xf32> -> vector<128x128xf32>
    %c0_65 = arith.constant 0 : index
    %c0_66 = arith.constant 0 : index
    %56 = vector.load %arg7[%c0_65, %c0_66] : memref<128x128xf32, #tpu.memory_space<vmem>>, vector<128x128xf32>
    %57 = arith.addf %56, %55 : vector<128x128xf32>
    %c0_67 = arith.constant 0 : index
    %c0_68 = arith.constant 0 : index
    %58 = vector.load %arg7[%c0_67, %c0_68] : memref<128x128xf32, #tpu.memory_space<vmem>>, vector<128x128xf32>
    tpu.vector_store %arg7[%c0_67, %c0_68], %57 {strides = array<i32>} : memref<128x128xf32, #tpu.memory_space<vmem>>, vector<128x128xf32>,
    %c2_69 = arith.constant 2 : index
    %c0_70 = arith.constant 0 : index
    %c0_71 = arith.constant 0 : index
    %59 = vector.load %arg6[%c2_69, %c0_70, %c0_71] : memref<10x18x4xbf16, #tpu.memory_space<vmem>>, vector<8x16x4xbf16>
    %60 = vector.shape_cast %59 : vector<8x16x4xbf16> to vector<128x4xbf16>
    %c6 = arith.constant 6 : index
    %c0_72 = arith.constant 0 : index
    %c0_73 = arith.constant 0 : index
    %61 = vector.load %arg3[%c6, %c0_72, %c0_73] : memref<9x4x128xbf16, #tpu.memory_space<vmem>>, vector<1x4x128xbf16>
    %62 = vector.shape_cast %61 : vector<1x4x128xbf16> to vector<4x128xbf16>
    %cst_74 = arith.constant dense<0.000000e+00> : vector<128x128xf32>
    %63 = tpu.matmul %60, %62, %cst_74 {dimension_numbers = #tpu.dot_dimension_numbers<[1], [0], [0], [1], [0, 0, 1, 1], [], []>} : vector<128x4xbf16>, vector<4x128xbf16>, vector<128x128xf32> -> vector<128x128xf32>
    %c0_75 = arith.constant 0 : index
    %c0_76 = arith.constant 0 : index
    %64 = vector.load %arg7[%c0_75, %c0_76] : memref<128x128xf32, #tpu.memory_space<vmem>>, vector<128x128xf32>
    %65 = arith.addf %64, %63 : vector<128x128xf32>
    %c0_77 = arith.constant 0 : index
    %c0_78 = arith.constant 0 : index
    %66 = vector.load %arg7[%c0_77, %c0_78] : memref<128x128xf32, #tpu.memory_space<vmem>>, vector<128x128xf32>
    tpu.vector_store %arg7[%c0_77, %c0_78], %65 {strides = array<i32>} : memref<128x128xf32, #tpu.memory_space<vmem>>, vector<128x128xf32>,
    %c2_79 = arith.constant 2 : index
    %c1_80 = arith.constant 1 : index
    %c0_81 = arith.constant 0 : index
    %67 = vector.load %arg6[%c2_79, %c1_80, %c0_81] : memref<10x18x4xbf16, #tpu.memory_space<vmem>>, vector<8x16x4xbf16>
    %68 = vector.shape_cast %67 : vector<8x16x4xbf16> to vector<128x4xbf16>
    %c7 = arith.constant 7 : index
    %c0_82 = arith.constant 0 : index
    %c0_83 = arith.constant 0 : index
    %69 = vector.load %arg3[%c7, %c0_82, %c0_83] : memref<9x4x128xbf16, #tpu.memory_space<vmem>>, vector<1x4x128xbf16>
    %70 = vector.shape_cast %69 : vector<1x4x128xbf16> to vector<4x128xbf16>
    %cst_84 = arith.constant dense<0.000000e+00> : vector<128x128xf32>
    %71 = tpu.matmul %68, %70, %cst_84 {dimension_numbers = #tpu.dot_dimension_numbers<[1], [0], [0], [1], [0, 0, 1, 1], [], []>} : vector<128x4xbf16>, vector<4x128xbf16>, vector<128x128xf32> -> vector<128x128xf32>
    %c0_85 = arith.constant 0 : index
    %c0_86 = arith.constant 0 : index
    %72 = vector.load %arg7[%c0_85, %c0_86] : memref<128x128xf32, #tpu.memory_space<vmem>>, vector<128x128xf32>
    %73 = arith.addf %72, %71 : vector<128x128xf32>
    %c0_87 = arith.constant 0 : index
    %c0_88 = arith.constant 0 : index
    %74 = vector.load %arg7[%c0_87, %c0_88] : memref<128x128xf32, #tpu.memory_space<vmem>>, vector<128x128xf32>
    tpu.vector_store %arg7[%c0_87, %c0_88], %73 {strides = array<i32>} : memref<128x128xf32, #tpu.memory_space<vmem>>, vector<128x128xf32>,
    %c2_89 = arith.constant 2 : index
    %c2_90 = arith.constant 2 : index
    %c0_91 = arith.constant 0 : index
    %75 = vector.load %arg6[%c2_89, %c2_90, %c0_91] : memref<10x18x4xbf16, #tpu.memory_space<vmem>>, vector<8x16x4xbf16>
    %76 = vector.shape_cast %75 : vector<8x16x4xbf16> to vector<128x4xbf16>
    %c8 = arith.constant 8 : index
    %c0_92 = arith.constant 0 : index
    %c0_93 = arith.constant 0 : index
    %77 = vector.load %arg3[%c8, %c0_92, %c0_93] : memref<9x4x128xbf16, #tpu.memory_space<vmem>>, vector<1x4x128xbf16>
    %78 = vector.shape_cast %77 : vector<1x4x128xbf16> to vector<4x128xbf16>
    %cst_94 = arith.constant dense<0.000000e+00> : vector<128x128xf32>
    %79 = tpu.matmul %76, %78, %cst_94 {dimension_numbers = #tpu.dot_dimension_numbers<[1], [0], [0], [1], [0, 0, 1, 1], [], []>} : vector<128x4xbf16>, vector<4x128xbf16>, vector<128x128xf32> -> vector<128x128xf32>
    %c0_95 = arith.constant 0 : index
    %c0_96 = arith.constant 0 : index
    %80 = vector.load %arg7[%c0_95, %c0_96] : memref<128x128xf32, #tpu.memory_space<vmem>>, vector<128x128xf32>
    %81 = arith.addf %80, %79 : vector<128x128xf32>
    %c0_97 = arith.constant 0 : index
    %c0_98 = arith.constant 0 : index
    %82 = vector.load %arg7[%c0_97, %c0_98] : memref<128x128xf32, #tpu.memory_space<vmem>>, vector<128x128xf32>
    tpu.vector_store %arg7[%c0_97, %c0_98], %81 {strides = array<i32>} : memref<128x128xf32, #tpu.memory_space<vmem>>, vector<128x128xf32>,
    %c0_99 = arith.constant 0 : index
    %c0_100 = arith.constant 0 : index
    %83 = vector.load %arg7[%c0_99, %c0_100] : memref<128x128xf32, #tpu.memory_space<vmem>>, vector<128x128xf32>
    %c0_101 = arith.constant 0 : index
    %c0_102 = arith.constant 0 : index
    %84 = vector.load %arg4[%c0_101, %c0_102] : memref<1x128xf32, #tpu.memory_space<vmem>>, vector<1x128xf32>
    %85 = vector.shape_cast %84 : vector<1x128xf32> to vector<128xf32>
    %86 = vector.shape_cast %85 : vector<128xf32> to vector<1x128xf32>
    %87 = vector.broadcast %86 : vector<1x128xf32> to vector<128x128xf32>
    %88 = arith.addf %83, %87 : vector<128x128xf32>
    %cst_103 = arith.constant 0.000000e+00 : f32
    %89 = vector.broadcast %cst_103 : f32 to vector<128x128xf32>
    %90 = arith.cmpf oge, %88, %89 : vector<128x128xf32>
    %cst_104 = arith.constant 1.000000e-01 : f32
    %91 = vector.broadcast %cst_104 : f32 to vector<128x128xf32>
    %92 = arith.mulf %91, %88 : vector<128x128xf32>
    %93 = arith.select %90, %88, %92 : vector<128x128xi1>, vector<128x128xf32>
    %94 = vector.shape_cast %93 : vector<128x128xf32> to vector<8x16x128xf32>
    %c0_105 = arith.constant 0 : index
    %c0_106 = arith.constant 0 : index
    %c0_107 = arith.constant 0 : index
    %c0_108 = arith.constant 0 : index
    %95 = vector.load %arg5[%c0_105, %c0_106, %c0_107, %c0_108] : memref<1x8x16x128xf32, #tpu.memory_space<vmem>>, vector<1x8x16x128xf32>
    %96 = vector.shape_cast %95 : vector<1x8x16x128xf32> to vector<8x16x128xf32>
    %97 = vector.shape_cast %94 : vector<8x16x128xf32> to vector<1x8x16x128xf32>
    tpu.vector_store %arg5[%c0_105, %c0_106, %c0_107, %c0_108], %97 {strides = array<i32>} : memref<1x8x16x128xf32, #tpu.memory_space<vmem>>, vector<1x8x16x128xf32>,
    return
  }
  func.func @transform_0(%arg0: i32, %arg1: i32) -> (i32, i32, i32, i32) {
    %c0_i32 = arith.constant 0 : i32
    %c0_i32_0 = arith.constant 0 : i32
    %c0_i32_1 = arith.constant 0 : i32
    %c0_i32_2 = arith.constant 0 : i32
    return %arg0, %c0_i32, %c0_i32_0, %c0_i32_1 : i32, i32, i32, i32
  }
  func.func @transform_1(%arg0: i32, %arg1: i32) -> (i32, i32, i32) {
    %c0_i32 = arith.constant 0 : i32
    %c0_i32_0 = arith.constant 0 : i32
    %c0_i32_1 = arith.constant 0 : i32
    %c0_i32_2 = arith.constant 0 : i32
    return %c0_i32, %c0_i32_0, %c0_i32_1 : i32, i32, i32
  }
  func.func @transform_2(%arg0: i32, %arg1: i32) -> (i32, i32) {
    %c0_i32 = arith.constant 0 : i32
    %c0_i32_0 = arith.constant 0 : i32
    %c0_i32_1 = arith.constant 0 : i32
    return %c0_i32, %c0_i32_0 : i32, i32
  }
  func.func @transform_3(%arg0: i32, %arg1: i32) -> (i32, i32, i32, i32) {
    %c0_i32 = arith.constant 0 : i32
    %c0_i32_0 = arith.constant 0 : i32
    %c0_i32_1 = arith.constant 0 : i32
    return %arg0, %arg1, %c0_i32, %c0_i32_0 : i32, i32, i32, i32
  }
}

</mosaic_0001>

<bundles_post_ra>
// kernel: conv_block_nchw.1
= control target key start
LH: loop header
LB: loop body
LE: loop exit
PB: predicated region body
PF: predicated region fallthrough
CT: control target
= control target key end

     0   :  { %s4152_s12 = smov 0   ;;  %s4154_s13 = smov 0   ;;  %s5001_s0 = inlined_call_operand.vmem [shape: bf16[2,16,16,4], index: 0, kind: input, shape index: {}]   ;;  %s5002_s1 = inlined_call_operand.vmem [shape: bf16[9,4,128], index: 1, kind: input, shape index: {}]   ;;  %s5003_s2 = inlined_call_operand.vmem [shape: f32[1,128], index: 2, kind: input, shape index: {}]   ;;  %s5004_s3 = inlined_call_operand.vmem [shape: f32[2,16,16,128], index: 3, kind: output, shape index: {}]  }
   0x1   :  { %s4156_s14 = smov 0   ;;  %s4158_s15 = smov 0  }
   0x2   :  { %s4160_s16 = smov 0  }
   0x3 LB: > { %s22_s17 = sadd.s32 1, %s4121_s14  ;;  %s25_s18 = sadd.s32 1, %s4125_s15  ;;  %s4129_s16 = sphi %s4160_s16, %s13_s16   ;;  %s4125_s15 = sphi %s4158_s15, %s5056_s15   ;;  %s4121_s14 = sphi %s4156_s14, %s5055_s14   ;;  %s4117_s13 = sphi %s4154_s13, %s5054_s13   ;;  %s4113_s12 = sphi %s4152_s12, %s5053_s12  }
   0x4   : > { %p23_p0 = scmp.ge.s32.totalorder %s22_s17, 2  ;;  %p3568_p1 = scmp.ge.s32.totalorder %s4129_s16, 1 }
   0x5   : > { %p151_p2 = scmp.lt.s32.totalorder %s4129_s16, 5 }
   0x6   : > { %s5058_s17 = smov (%p23_p0, %s22_s17), 0  ;;  %s5060_s18 = smov (!%p23_p0, %s25_s18), %s4125_s15 }
   0x7   : > { %p152_p3 = pnand %p3568_p1, %p151_p2  ;;  %p27_p4 = scmp.ge.s32.totalorder %s5060_s18, 2 }
   0x9   : > { %s5062_s18 = smov (%p27_p4, %s5060_s18), 0  ;;  %155 = sbr.rel (%p152_p3) target bundleno = 456 (0x1c8), region = 32 }
   0xe   : > { %vm198_vm0 = vcmask 27648   ;;  %vm201_vm1 = vcmask 24576   ;;  %p180_p5 = scmp.lt.s32.totalorder %s4117_s13, 1  ;;  %s4188_s19 = sshll.u32 %s4113_s12, 3  ;;  %v4131_v0 = vmov 0  }
   0xf   : > { %203 = vst.msk [vmem:[#allocation2 + $0xc] sm:$0xf] %vm198_vm0, %v4131_v0  ;;  %199 = vst.msk [vmem:[#allocation2] sm:$0xf] %vm198_vm0, %v4131_v0  ;;  %p188_p6 = scmp.lt.s32.totalorder %s4188_s19, 15  ;;  %s3768_s20 = sshll.u32 %s4113_s12, 6 }
  0x10   : > { %200 = vst.msk [vmem:[#allocation2 + $0x4] sm:$0xf] %vm198_vm0, %v4131_v0  ;;  %204 = vst.msk [vmem:[#allocation2 + $0x10] sm:$0xf] %vm198_vm0, %v4131_v0  ;;  %s5064_s13 = smov (!%p180_p5, %s4117_s13), 1  ;;  %p3578_p7 = scmp.le.s32.totalorder %s4113_s12, 0 }
  0x11   : > { %206 = vst.msk [vmem:[#allocation2 + $0x18] sm:$0xf] %vm198_vm0, %v4131_v0  ;;  %207 = vst.msk [vmem:[#allocation2 + $0x1c] sm:$0xf] %vm198_vm0, %v4131_v0  ;;  %s189_s21 = scalar_select %p188_p6, %s4188_s19, 15 }
  0x12   : > { %209 = vst.msk [vmem:[#allocation2 + $0x24] sm:$0xf] %vm198_vm0, %v4131_v0  ;;  %210 = vst.msk [vmem:[#allocation2 + $0x28] sm:$0xf] %vm198_vm0, %v4131_v0  ;;  %s3766_s22 = sshll.u32 %s5064_s13, 7  ;;  %s3573_s23 = sshll.u32 %s5064_s13, 5 }
  0x13   : > { %212 = vst.msk [vmem:[#allocation2 + $0x30] sm:$0xf] %vm198_vm0, %v4131_v0  ;;  %213 = vst.msk [vmem:[#allocation2 + $0x34] sm:$0xf] %vm198_vm0, %v4131_v0  ;;  %s4229_s26 = scalar_lea.vmem %s5001_s0, %s3766_s22  ;;  %s3572_s27 = sshll.u32 %s189_s21, 1 }
  0x14   : > { %215 = vst.msk [vmem:[#allocation2 + $0x3c] sm:$0xf] %vm198_vm0, %v4131_v0  ;;  %216 = vst.msk [vmem:[#allocation2 + $0x40] sm:$0xf] %vm198_vm0, %v4131_v0  ;;  %vm414_vm2 = vsmask.f32 7938  ;;  %s192_s28 = sadd.s32 %s3573_s23, %s3572_s27  ;;  %s4232_s29 = scalar_lea.vmem %s4229_s26, %s3768_s20 }
  0x15   : > { %218 = vst.msk [vmem:[#allocation2 + $0x48] sm:$0xf] %vm198_vm0, %v4131_v0  ;;  %219 = vst.msk [vmem:[#allocation2 + $0x4c] sm:$0xf] %vm198_vm0, %v4131_v0  ;;  %vm249_vm3 = vsmask.f32 256 }
  0x16   : > { %221 = vst.msk [vmem:[#allocation2 + $0x54] sm:$0xf] %vm198_vm0, %v4131_v0  ;;  %222 = vst.msk [vmem:[#allocation2 + $0x58] sm:$0xf] %vm198_vm0, %v4131_v0  ;;  %vm250_vm4 = vsmask.f32 4368 }
  0x17   : > { %224 = vst.msk [vmem:[#allocation2 + $0x60] sm:$0xf] %vm198_vm0, %v4131_v0  ;;  %225 = vst.msk [vmem:[#allocation2 + $0x64] sm:$0xf] %vm198_vm0, %v4131_v0  ;;  %s3574_s30 = sshll.u32 %s192_s28, 3  ;;  %s3579_s7 = sadd.s32 (!%p3578_p7), 4294967295, %s4188_s19 }
  0x18   : > { %227 = vst.msk [vmem:[#allocation2 + $0x6c] sm:$0xf] %vm198_vm0, %v4131_v0  ;;  %228 = vst.msk [vmem:[#allocation2 + $0x70] sm:$0xf] %vm198_vm0, %v4131_v0  ;;  %v233_v1 = vld [vmem:[%s4232_s29] sm:$0xf]  ;;  %s4239_s6 = scalar_lea.vmem %s5004_s3, %s3574_s30 }
  0x19   : > { %205 = vst.msk [vmem:[#allocation2 + $0x14] sm:$0x1] %vm201_vm1, %v4131_v0  ;;  %202 = vst.msk [vmem:[#allocation2 + $0x8] sm:$0x1] %vm201_vm1, %v4131_v0  ;;  %v234_v2 = vld [vmem:[%s4232_s29 + $0x4] sm:$0xf] }
  0x1a   : > { %208 = vst.msk [vmem:[#allocation2 + $0x20] sm:$0x1] %vm201_vm1, %v4131_v0  ;;  %211 = vst.msk [vmem:[#allocation2 + $0x2c] sm:$0x1] %vm201_vm1, %v4131_v0  ;;  %v253_v3 = vshrl.u32 %v233_v1, 16  ;;  %v256_v4 = vshll.u32 %v233_v1, 16 }
  0x1b   : > { %214 = vst.msk [vmem:[#allocation2 + $0x38] sm:$0x1] %vm201_vm1, %v4131_v0  ;;  %217 = vst.msk [vmem:[#allocation2 + $0x44] sm:$0x1] %vm201_vm1, %v4131_v0  ;;  %v261_v6 = vshrl.u32 %v234_v2, 16  ;;  %v264_v7 = vshll.u32 %v234_v2, 16 }
  0x1c   : > { %220 = vst.msk [vmem:[#allocation2 + $0x50] sm:$0x1] %vm201_vm1, %v4131_v0  ;;  %223 = vst.msk [vmem:[#allocation2 + $0x5c] sm:$0x1] %vm201_vm1, %v4131_v0  ;;  %v416_v8 = vld [vmem:[#allocation2 + $0xc] sm:$0xf] }
  0x1d   : > { %226 = vst.msk [vmem:[#allocation2 + $0x68] sm:$0x1] %vm201_vm1, %v4131_v0  ;;  %229 = vst.msk [vmem:[#allocation2 + $0x74] sm:$0x1] %vm201_vm1, %v4131_v0  ;;  %v235_v10 = vld [vmem:[%s4232_s29 + $0x8] sm:$0xf] }
  0x1e   : > { %vm4242_vm5 = vmand %vm198_vm0, %vm414_vm2  ;;  %v255_v11 = vrot.slane %v253_v3, 7  ;;  %v263_v13 = vrot.slane %v261_v6, 7  ;;  %v270_v14 = vshrl.u32 %v235_v10, 16  ;;  %v236_v15 = vld [vmem:[%s4232_s29 + $0xc] sm:$0xf]  ;;  %v273_v17 = vshll.u32 %v235_v10, 16 }
  0x1f   : > { %vm4248_vm6 = vmor %vm249_vm3, %vm250_vm4  ;;  %v278_v18 = vshrl.u32 %v236_v15, 16  ;;  %v281_v19 = vshll.u32 %v236_v15, 16  ;;  %v237_v20 = vld [vmem:[%s4232_s29 + $0x10] sm:$0xf]  ;;  %v238_v25 = vld [vmem:[%s4232_s29 + $0x14] sm:$0xf] }
  0x20   : > { %v422_v9 = vld [vmem:[#allocation2 + $0x14] sm:$0x1]  ;;  %vm4255_vm7 = vmand %vm201_vm1, %vm249_vm3  ;;  %v258_v21 = vor.u32 %v256_v4, %v255_v11  ;;  %v259_v22 = vrot.slane %v255_v11, 4  ;;  %v266_v23 = vor.u32 %v264_v7, %v263_v13  ;;  %v268_v24 = vrot.slane %v263_v13, 4  ;;  %v425_v27 = vld [vmem:[#allocation2 + $0x18] sm:$0xf] }
  0x21   : > { %v272_v26 = vrot.slane %v270_v14, 7  ;;  %v280_v28 = vrot.slane %v278_v18, 7  ;;  %v287_v29 = vshrl.u32 %v237_v20, 16  ;;  %v290_v30 = vshll.u32 %v237_v20, 16  ;;  %v429_v34 = vld [vmem:[#allocation2 + $0x20] sm:$0x1] }
  0x22   : > { %v417_v31 = vsel %vm4242_vm5, %v258_v21, %v416_v8  ;;  %v267_v32 = vsel %vm4248_vm6, %v259_v22, %v266_v23  ;;  %v423_v33 = vsel %vm4255_vm7, %v268_v24, %v422_v9  ;;  %v295_v35 = vshrl.u32 %v238_v25, 16  ;;  %v239_v36 = vld [vmem:[%s4232_s29 + $0x18] sm:$0xf]  ;;  %v240_v41 = vld [vmem:[%s4232_s29 + $0x1c] sm:$0xf]  ;;  %s3769_s8 = sshll.u32 (!%p3578_p7), %s3579_s7, 3 }
  0x23   : > { %418 = vst [vmem:[#allocation2 + $0xc] sm:$0xf] %v417_v31  ;;  %419 = vst.msk [vmem:[#allocation2 + $0x10] sm:$0xf] %vm198_vm0, %v267_v32  ;;  %v275_v37 = vor.u32 %v273_v17, %v272_v26  ;;  %v276_v38 = vrot.slane %v272_v26, 4  ;;  %v283_v39 = vor.u32 %v281_v19, %v280_v28  ;;  %v285_v40 = vrot.slane %v280_v28, 4  ;;  %s481_s9 = scalar_lea.vmem (!%p3578_p7), %s4229_s26, %s3769_s8 }
  0x24   : > { %424 = vst [vmem:[#allocation2 + $0x14] sm:$0x1] %v423_v33  ;;  %v289_v42 = vrot.slane %v287_v29, 7  ;;  %v297_v43 = vrot.slane %v295_v35, 7  ;;  %v298_v44 = vshll.u32 %v238_v25, 16  ;;  %v304_v45 = vshrl.u32 %v239_v36, 16 }
  0x25   : > { %v241_v46 = vld [vmem:[%s4232_s29 + $0x20] sm:$0xf]  ;;  %v426_v47 = vsel %vm4242_vm5, %v275_v37, %v425_v27  ;;  %v284_v48 = vsel %vm4248_vm6, %v276_v38, %v283_v39  ;;  %v430_v49 = vsel %vm4255_vm7, %v285_v40, %v429_v34  ;;  %v432_v50 = vld [vmem:[#allocation2 + $0x24] sm:$0xf]  ;;  %v436_v51 = vld [vmem:[#allocation2 + $0x2c] sm:$0x1] }
  0x26   : > { %v307_v52 = vshll.u32 %v239_v36, 16  ;;  %427 = vst [vmem:[#allocation2 + $0x18] sm:$0xf] %v426_v47  ;;  %428 = vst.msk [vmem:[#allocation2 + $0x1c] sm:$0xf] %vm198_vm0, %v284_v48  ;;  %v292_v53 = vor.u32 %v290_v30, %v289_v42  ;;  %v293_v54 = vrot.slane %v289_v42, 4  ;;  %v300_v55 = vor.u32 %v298_v44, %v297_v43 }
  0x27   : > { %431 = vst [vmem:[#allocation2 + $0x20] sm:$0x1] %v430_v49  ;;  %v302_v56 = vrot.slane %v297_v43, 4  ;;  %v242_v57 = vld [vmem:[%s4232_s29 + $0x24] sm:$0xf]  ;;  %v306_v58 = vrot.slane %v304_v45, 7 }
  0x28   : > { %v312_v59 = vshrl.u32 %v240_v41, 16  ;;  %v315_v60 = vshll.u32 %v240_v41, 16  ;;  %v321_v61 = vshrl.u32 %v241_v46, 16  ;;  %v243_v62 = vld [vmem:[%s4232_s29 + $0x28] sm:$0xf]  ;;  %v433_v63 = vsel %vm4242_vm5, %v292_v53, %v432_v50 }
  0x29   : > { %v301_v0 = vsel %vm4248_vm6, %v293_v54, %v300_v55  ;;  %v437_v1 = vsel %vm4255_vm7, %v302_v56, %v436_v51  ;;  %v439_v2 = vld [vmem:[#allocation2 + $0x30] sm:$0xf]  ;;  %v443_v3 = vld [vmem:[#allocation2 + $0x38] sm:$0x1]  ;;  %v324_v4 = vshll.u32 %v241_v46, 16  ;;  %v309_v6 = vor.u32 %v307_v52, %v306_v58 }
  0x2a   : > { %434 = vst [vmem:[#allocation2 + $0x24] sm:$0xf] %v433_v63  ;;  %435 = vst.msk [vmem:[#allocation2 + $0x28] sm:$0xf] %vm198_vm0, %v301_v0  ;;  %v310_v7 = vrot.slane %v306_v58, 4  ;;  %v314_v8 = vrot.slane %v312_v59, 7 }
  0x2b   : > { %438 = vst [vmem:[#allocation2 + $0x2c] sm:$0x1] %v437_v1  ;;  %v323_v9 = vrot.slane %v321_v61, 7  ;;  %v244_v10 = vld [vmem:[%s4232_s29 + $0x2c] sm:$0xf]  ;;  %v329_v13 = vshrl.u32 %v242_v57, 16  ;;  %v440_v18 = vsel %vm4242_vm5, %v309_v6, %v439_v2 }
  0x2c   : > { %v446_v11 = vld [vmem:[#allocation2 + $0x3c] sm:$0xf]  ;;  %v332_v14 = vshll.u32 %v242_v57, 16  ;;  %v338_v15 = vshrl.u32 %v243_v62, 16  ;;  %v341_v17 = vshll.u32 %v243_v62, 16  ;;  %v317_v19 = vor.u32 %v315_v60, %v314_v8 }
  0x2d   : > { %v319_v20 = vrot.slane %v314_v8, 4  ;;  %v326_v21 = vor.u32 %v324_v4, %v323_v9  ;;  %v245_v22 = vld [vmem:[%s4232_s29 + $0x30] sm:$0xf]  ;;  %441 = vst [vmem:[#allocation2 + $0x30] sm:$0xf] %v440_v18  ;;  %v327_v23 = vrot.slane %v323_v9, 4 }
  0x2e   : > { %v331_v24 = vrot.slane %v329_v13, 7  ;;  %v340_v25 = vrot.slane %v338_v15, 7  ;;  %v346_v26 = vshrl.u32 %v244_v10, 16  ;;  %v246_v27 = vld [vmem:[%s4232_s29 + $0x34] sm:$0xf]  ;;  %v318_v28 = vsel %vm4248_vm6, %v310_v7, %v317_v19 }
  0x2f   : > { %v444_v29 = vsel %vm4255_vm7, %v319_v20, %v443_v3  ;;  %v447_v30 = vsel %vm4242_vm5, %v326_v21, %v446_v11  ;;  %v450_v31 = vld [vmem:[#allocation2 + $0x44] sm:$0x1]  ;;  %v453_v32 = vld [vmem:[#allocation2 + $0x48] sm:$0xf]  ;;  %v349_v33 = vshll.u32 %v244_v10, 16  ;;  %v355_v40 = vshrl.u32 %v245_v22, 16 }
  0x30   : > { %442 = vst.msk [vmem:[#allocation2 + $0x34] sm:$0xf] %vm198_vm0, %v318_v28  ;;  %445 = vst [vmem:[#allocation2 + $0x38] sm:$0x1] %v444_v29  ;;  %v334_v34 = vor.u32 %v332_v14, %v331_v24  ;;  %v336_v35 = vrot.slane %v331_v24, 4  ;;  %v343_v36 = vor.u32 %v341_v17, %v340_v25  ;;  %v344_v37 = vrot.slane %v340_v25, 4 }
  0x31   : > { %448 = vst [vmem:[#allocation2 + $0x3c] sm:$0xf] %v447_v30  ;;  %v247_v38 = vld [vmem:[%s4232_s29 + $0x38] sm:$0xf]  ;;  %v348_v39 = vrot.slane %v346_v26, 7  ;;  %v358_v41 = vshll.u32 %v245_v22, 16 }
  0x32   : > { %v363_v42 = vshrl.u32 %v246_v27, 16  ;;  %v248_v43 = vld [vmem:[%s4232_s29 + $0x3c] sm:$0xf]  ;;  %v335_v44 = vsel %vm4248_vm6, %v327_v23, %v334_v34  ;;  %v451_v45 = vsel %vm4255_vm7, %v336_v35, %v450_v31  ;;  %v454_v46 = vsel %vm4242_vm5, %v343_v36, %v453_v32  ;;  %v457_v47 = vld [vmem:[#allocation2 + $0x50] sm:$0x1] }
  0x33   : > { %v366_v48 = vshll.u32 %v246_v27, 16  ;;  %449 = vst.msk [vmem:[#allocation2 + $0x40] sm:$0xf] %vm198_vm0, %v335_v44  ;;  %452 = vst [vmem:[#allocation2 + $0x44] sm:$0x1] %v451_v45  ;;  %v351_v49 = vor.u32 %v349_v33, %v348_v39  ;;  %v353_v50 = vrot.slane %v348_v39, 4 }
  0x34   : > { %455 = vst [vmem:[#allocation2 + $0x48] sm:$0xf] %v454_v46  ;;  %v357_v51 = vrot.slane %v355_v40, 7  ;;  %v365_v52 = vrot.slane %v363_v42, 7  ;;  %v460_v53 = vld [vmem:[#allocation2 + $0x54] sm:$0xf] }
  0x35   : > { %v372_v54 = vshrl.u32 %v247_v38, 16  ;;  %v375_v55 = vshll.u32 %v247_v38, 16  ;;  %v380_v56 = vshrl.u32 %v248_v43, 16  ;;  %v383_v57 = vshll.u32 %v248_v43, 16  ;;  %v464_v62 = vld [vmem:[#allocation2 + $0x5c] sm:$0x1] }
  0x36   : > { %v352_v58 = vsel %vm4248_vm6, %v344_v37, %v351_v49  ;;  %v458_v59 = vsel %vm4255_vm7, %v353_v50, %v457_v47  ;;  %v360_v60 = vor.u32 %v358_v41, %v357_v51  ;;  %v361_v61 = vrot.slane %v357_v51, 4  ;;  %v467_v4 = vld [vmem:[#allocation2 + $0x60] sm:$0xf]  ;;  %v471_v10 = vld [vmem:[#allocation2 + $0x68] sm:$0x1] }
  0x37   : > { %456 = vst.msk [vmem:[#allocation2 + $0x4c] sm:$0xf] %vm198_vm0, %v352_v58  ;;  %459 = vst [vmem:[#allocation2 + $0x50] sm:$0x1] %v458_v59  ;;  %v368_v63 = vor.u32 %v366_v48, %v365_v52  ;;  %v370_v0 = vrot.slane %v365_v52, 4  ;;  %v374_v1 = vrot.slane %v372_v54, 7 }
  0x38   : > { %v382_v2 = vrot.slane %v380_v56, 7  ;;  %v461_v3 = vsel %vm4242_vm5, %v360_v60, %v460_v53 }
  0x39   : > { %462 = vst [vmem:[#allocation2 + $0x54] sm:$0xf] %v461_v3  ;;  %v369_v6 = vsel %vm4248_vm6, %v361_v61, %v368_v63  ;;  %v465_v7 = vsel %vm4255_vm7, %v370_v0, %v464_v62  ;;  %v377_v8 = vor.u32 %v375_v55, %v374_v1  ;;  %v378_v9 = vrot.slane %v374_v1, 4  ;;  %477 = sbr.rel (%p3578_p7) target bundleno = 72 (0x48), region = 36 }
  0x3a   : > { %463 = vst.msk [vmem:[#allocation2 + $0x58] sm:$0xf] %vm198_vm0, %v369_v6  ;;  %466 = vst [vmem:[#allocation2 + $0x5c] sm:$0x1] %v465_v7  ;;  %v385_v11 = vor.u32 %v383_v57, %v382_v2  ;;  %v387_v13 = vrot.slane %v382_v2, 4 }
  0x3b   : > { %v468_v14 = vsel %vm4242_vm5, %v377_v8, %v467_v4 }
  0x3c   : > { %469 = vst [vmem:[#allocation2 + $0x60] sm:$0xf] %v468_v14  ;;  %v386_v15 = vsel %vm4248_vm6, %v378_v9, %v385_v11  ;;  %v472_v17 = vsel %vm4255_vm7, %v387_v13, %v471_v10 }
  0x3d   : > { %470 = vst.msk [vmem:[#allocation2 + $0x64] sm:$0xf] %vm198_vm0, %v386_v15  ;;  %473 = vst [vmem:[#allocation2 + $0x68] sm:$0x1] %v472_v17 }
  0x3e   : > { %v482_v18 = vld [vmem:[%s481_s9] sm:$0xf]  ;;  %v483_v19 = vld [vmem:[%s481_s9 + $0x4] sm:$0xf]  ;;  %v508_v27 = vld [vmem:[#allocation2 + $0x8] sm:$0x1] }
  0x3f   : > { %v485_v20 = vshrl.u32 %v482_v18, 16  ;;  %v488_v21 = vshll.u32 %v482_v18, 16  ;;  %v493_v22 = vshrl.u32 %v483_v19, 16  ;;  %v496_v23 = vshll.u32 %v483_v19, 16  ;;  %v504_v26 = vld [vmem:[#allocation2] sm:$0xf] }
  0x41   : > { %v487_v24 = vrot.slane %v485_v20, 7  ;;  %v495_v25 = vrot.slane %v493_v22, 7 }
  0x43   : > { %v490_v28 = vor.u32 %v488_v21, %v487_v24  ;;  %v491_v29 = vrot.slane %v487_v24, 4  ;;  %v498_v30 = vor.u32 %v496_v23, %v495_v25  ;;  %v500_v31 = vrot.slane %v495_v25, 4 }
  0x45   : > { %v505_v32 = vsel %vm4242_vm5, %v490_v28, %v504_v26  ;;  %v499_v33 = vsel %vm4248_vm6, %v491_v29, %v498_v30  ;;  %v509_v34 = vsel %vm4255_vm7, %v500_v31, %v508_v27 }
  0x46   : > { %506 = vst [vmem:[#allocation2] sm:$0xf] %v505_v32  ;;  %507 = vst.msk [vmem:[#allocation2 + $0x4] sm:$0xf] %vm198_vm0, %v499_v33 }
  0x47   : > { %510 = vst [vmem:[#allocation2 + $0x8] sm:$0x1] %v509_v34 }
  0x48 PF: > { %p3582_p8 = scmp.ge.s32.totalorder %s4113_s12, 1 }
  0x4a   : > { %514 = sbr.rel (%p3582_p8) target bundleno = 89 (0x59), region = 40 }
  0x4f   : > { %v3585_v35 = vld [vmem:[%s4232_s29 + $0x40] sm:$0xf]  ;;  %v3586_v36 = vld [vmem:[%s4232_s29 + $0x44] sm:$0xf]  ;;  %v542_v43 = vld [vmem:[#allocation2 + $0x6c] sm:$0xf] }
  0x50   : > { %v522_v37 = vshrl.u32 %v3585_v35, 16  ;;  %v525_v38 = vshll.u32 %v3585_v35, 16  ;;  %v530_v39 = vshrl.u32 %v3586_v36, 16  ;;  %v533_v40 = vshll.u32 %v3586_v36, 16  ;;  %v546_v44 = vld [vmem:[#allocation2 + $0x74] sm:$0x1] }
  0x52   : > { %v524_v41 = vrot.slane %v522_v37, 7  ;;  %v532_v42 = vrot.slane %v530_v39, 7 }
  0x54   : > { %v527_v45 = vor.u32 %v525_v38, %v524_v41  ;;  %v528_v46 = vrot.slane %v524_v41, 4  ;;  %v535_v47 = vor.u32 %v533_v40, %v532_v42  ;;  %v537_v48 = vrot.slane %v532_v42, 4 }
  0x56   : > { %v543_v49 = vsel %vm4242_vm5, %v527_v45, %v542_v43  ;;  %v536_v50 = vsel %vm4248_vm6, %v528_v46, %v535_v47  ;;  %v547_v51 = vsel %vm4255_vm7, %v537_v48, %v546_v44 }
  0x57   : > { %544 = vst [vmem:[#allocation2 + $0x6c] sm:$0xf] %v543_v49  ;;  %545 = vst.msk [vmem:[#allocation2 + $0x70] sm:$0xf] %vm198_vm0, %v536_v50 }
  0x58   : > { %548 = vst [vmem:[#allocation2 + $0x74] sm:$0x1] %v547_v51 }
  0x59 PF: > { %v565_v52 = vld [vmem:[%s5002_s1] sm:$0x3]  ;;  %vm631_vm8 = vcmask 1041408   ;;  %vm606_vm9 = vcmask 31744   ;;  %v4068_v12 = vld [vmem:[#allocation2 + $0x30] sm:$0xff]   ;;  %v4071_v58 = vld [vmem:[#allocation2 + $0x18] sm:$0xff]  }
  0x5a   : > { %v4067_v53 = vld [vmem:[#allocation2] sm:$0xff]   ;;  %4016 = vmatprep.subr.msk.bf16.mxu0 %vm631_vm8, %v565_v52  ;;  %4017 = vmatprep.subr.msk.bf16.mxu1 %vm631_vm8, %v565_v52  ;;  %v633_v5 = vsel %vm631_vm8, %v565_v52, 0  ;;  %v4069_v16 = vld [vmem:[#allocation2 + $0xc] sm:$0xff]   ;;  %vm1213_vm10 = vcmask 1042432   ;;  %v4074_v62 = vld [vmem:[#allocation2 + $0x54] sm:$0xff]   ;;  %vm1214_vm11 = vcmask 1046532  }
  0x5b   : > { %3853 = vmatpush3.bf16.msra.mxu0 %v633_v5  ;;  %4015 = vmatpush3.bf16.msra.mxu1 %v633_v5  ;;  %v4070_v54 = vld [vmem:[#allocation2 + $0x3c] sm:$0xff]   ;;  %v3628_v57 = vld [vmem:[%s5002_s1 + $0x4] sm:$0x3]  ;;  %v4072_v60 = vld [vmem:[#allocation2 + $0x48] sm:$0xff]   ;;  %vm772_vm12 = vsmask.f32 3328 }
  0x5c   : > { %3854 = vmatprep.mubr.msk.bf16.mxu0 %vm606_vm9, %v4067_v53  ;;  %3862 = vmatprep.mubr.msk.bf16.mxu1 %vm606_vm9, %v4068_v12  ;;  %v3603_v55 = vld [vmem:[%s5002_s1 + $0x2] sm:$0x3]  ;;  %v1323_v59 = vsel %vm631_vm8, %v3628_v57, 0  ;;  %v4073_v61 = vld [vmem:[#allocation2 + $0x24] sm:$0xff]   ;;  %vm773_vm13 = vsmask.f32 7440  ;;  %vm4372_vm14 = vmor %vm1213_vm10, %vm1214_vm11 }
  0x5d   : > { %4018 = vmatprep.subr.msk.bf16.mxu1 %vm631_vm8, %v3603_v55  ;;  %v1018_v56 = vsel %vm631_vm8, %v3603_v55, 0  ;;  %4019 = vmatprep.subr.msk.bf16.mxu0 %vm631_vm8, %v3628_v57  ;;  %v748_v63 = vld [vmem:[#allocation2] sm:$0xf]  ;;  %v749_v0 = vld [vmem:[#allocation2 + $0x4] sm:$0xf]  ;;  %vm4379_vm15 = vmor %vm772_vm12, %vm773_vm13 }
  0x5e   : > { %3855 = vmatmul.mubr.msk.bf16.vlgmr.msra.gmra.mxu0 %vm606_vm9, %v4069_v16  ;;  %3863 = vmatmul.mubr.msk.bf16.vlgmr.msra.gmra.mxu1 %vm606_vm9, %v4070_v54  ;;  %v750_v1 = vld [vmem:[#allocation2 + $0x8] sm:$0x1]  ;;  %v776_v2 = vshrl.u32 %v748_v63, 16  ;;  %v779_v3 = vshll.u32 %v748_v63, 16  ;;  %v785_v4 = vshll.u32 %v749_v0, 16  ;;  %v789_v6 = vshrl.u32 %v749_v0, 16 }
  0x5f   : > { %3871 = vmatpush3.bf16.msra.mxu1 %v1018_v56  ;;  %3889 = vmatpush3.bf16.msra.mxu0 %v1323_v59  ;;  %v1165_v7 = vld [vmem:[#allocation2] sm:$0xe]  ;;  %v795_v8 = vshll.u32 %v750_v1, 16  ;;  %v1166_v9 = vld [vmem:[#allocation2 + $0x4] sm:$0xf] }
  0x60   : > { %3858 = vmatprep.mubr.msk.bf16.mxu0 %vm606_vm9, %v4071_v58  ;;  %3866 = vmatprep.mubr.msk.bf16.mxu1 %vm606_vm9, %v4072_v60  ;;  %v1167_v10 = vld [vmem:[#allocation2 + $0x8] sm:$0x1]  ;;  %v3620_v11 = vrot.slane %v1165_v7, 9  ;;  %v778_v13 = vrot.slane %v776_v2, 4  ;;  %v781_v14 = vrot.slane %v779_v3, 5  ;;  %v787_v15 = vrot.slane %v785_v4, 5 }
  0x61   : > { %v791_v17 = vrot.slane %v789_v6, 4  ;;  %v751_v19 = vld [vmem:[#allocation2 + $0xc] sm:$0xf]  ;;  %v797_v20 = vrot.slane %v795_v8, 5  ;;  %v1218_v21 = vrot.slane %v1166_v9, 5  ;;  %v1221_v22 = vrot.slane %v1167_v10, 5 }
  0x62   : > { %v752_v23 = vld [vmem:[#allocation2 + $0x10] sm:$0xf]  ;;  %v800_v24 = vshrl.u32 %v751_v19, 16  ;;  %v782_v25 = vor.u32 %v781_v14, %v778_v13  ;;  %v753_v27 = vld [vmem:[#allocation2 + $0x14] sm:$0x1]  ;;  %v803_v28 = vshll.u32 %v751_v19, 16 }
  0x63   : > { %v792_v26 = vor.u32 %v791_v17, %v787_v15  ;;  %v809_v29 = vshll.u32 %v752_v23, 16  ;;  %v1168_v30 = vld [vmem:[#allocation2 + $0xc] sm:$0xe]  ;;  %v1219_v32 = vsel %vm4372_vm14, %v3620_v11, %v1218_v21  ;;  %v1220_v33 = vrot.slane %v1218_v21, 4  ;;  %v1169_v36 = vld [vmem:[#allocation2 + $0x10] sm:$0xf] }
  0x64   : > { %v802_v34 = vrot.slane %v800_v24, 4  ;;  %v813_v35 = vshrl.u32 %v752_v23, 16  ;;  %v783_v37 = vrot.slane %v782_v25, 4  ;;  %v805_v39 = vrot.slane %v803_v28, 5  ;;  %v1170_v41 = vld [vmem:[#allocation2 + $0x14] sm:$0x1] }
  0x65   : > { %v793_v38 = vrot.slane %v792_v26, 4  ;;  %v811_v40 = vrot.slane %v809_v29, 5  ;;  %v1222_v42 = vsel %vm4372_vm14, %v1220_v33, %v1221_v22  ;;  %v819_v44 = vshll.u32 %v753_v27, 16  ;;  %v3645_v46 = vld [vmem:[%s5002_s1 + $0x6] sm:$0x3] }
  0x66   : > { %3859 = vmatmul.mubr.msk.bf16.gmra.mxu0 %vm606_vm9, %v4073_v61  ;;  %3867 = vmatmul.mubr.msk.bf16.gmra.mxu1 %vm606_vm9, %v4074_v62  ;;  %v815_v43 = vrot.slane %v813_v35, 4  ;;  %v3621_v45 = vrot.slane %v1168_v30, 9  ;;  %v788_v47 = vsel %vm4379_vm15, %v783_v37, %v787_v15  ;;  %v3629_v49 = vcombine.low %v1219_v32, %v1222_v42  ;;  %v3662_v51 = vld [vmem:[%s5002_s1 + $0x8] sm:$0x3]  ;;  %v754_v52 = vld [vmem:[#allocation2 + $0x18] sm:$0xf] }
  0x67   : > { %v798_v48 = vsel %vm4379_vm15, %v793_v38, %v797_v20  ;;  %v806_v50 = vor.u32 %v805_v39, %v802_v34  ;;  %4020 = vmatprep.subr.msk.bf16.mxu1 %vm631_vm8, %v3645_v46  ;;  %v821_v12 = vrot.slane %v819_v44, 5  ;;  %v1225_v16 = vrot.slane %v1169_v36, 5  ;;  %4021 = vmatprep.subr.msk.bf16.mxu0 %vm631_vm8, %v3662_v51  ;;  %v755_v54 = vld [vmem:[#allocation2 + $0x1c] sm:$0xf]  ;;  %v756_v59 = vld [vmem:[#allocation2 + $0x20] sm:$0x1] }
  0x68   : > { %v3604_v53 = vcombine.low %v788_v47, %v798_v48  ;;  %v816_v5 = vor.u32 %v815_v43, %v811_v40  ;;  %3890 = vmatprep.mubr.msk.bf16.mxu0 %vm606_vm9, %v3629_v49  ;;  %v1228_v56 = vrot.slane %v1170_v41, 5  ;;  %v1553_v57 = vsel %vm631_vm8, %v3645_v46, 0  ;;  %v1171_v0 = vld [vmem:[#allocation2 + $0x18] sm:$0xe]  ;;  %v1172_v6 = vld [vmem:[#allocation2 + $0x1c] sm:$0xf] }
  0x69   : > { %v807_v55 = vrot.slane %v806_v50, 4  ;;  %v1967_v58 = vsel %vm631_vm8, %v3662_v51, 0  ;;  %v1226_v61 = vsel %vm4372_vm14, %v3621_v45, %v1225_v16  ;;  %v1227_v62 = vrot.slane %v1225_v16, 4  ;;  %v1173_v11 = vld [vmem:[#allocation2 + $0x20] sm:$0x1] }
  0x6a   : > { %3872 = vmatprep.mubr.msk.bf16.mxu1 %vm606_vm9, %v3604_v53  ;;  %v817_v60 = vrot.slane %v816_v5, 4  ;;  %v824_v63 = vshrl.u32 %v754_v52, 16  ;;  %v827_v2 = vshll.u32 %v754_v52, 16  ;;  %v833_v3 = vshll.u32 %v755_v54, 16  ;;  %v757_v13 = vld [vmem:[#allocation2 + $0x24] sm:$0xf] }
  0x6b   : > { %v812_v1 = vsel %vm4379_vm15, %v807_v55, %v811_v40  ;;  %v837_v4 = vshrl.u32 %v755_v54, 16  ;;  %v1229_v8 = vsel %vm4372_vm14, %v1227_v62, %v1228_v56  ;;  %v843_v10 = vshll.u32 %v756_v59, 16  ;;  %v758_v20 = vld [vmem:[#allocation2 + $0x28] sm:$0xf]  ;;  %v759_v27 = vld [vmem:[#allocation2 + $0x2c] sm:$0x1] }
  0x6c   : > { %v822_v7 = vsel %vm4379_vm15, %v817_v60, %v821_v12  ;;  %v826_v9 = vrot.slane %v824_v63, 4  ;;  %v3630_v15 = vcombine.low %v1226_v61, %v1229_v8  ;;  %v829_v17 = vrot.slane %v827_v2, 5  ;;  %v1174_v35 = vld [vmem:[#allocation2 + $0x24] sm:$0xe]  ;;  %v1175_v40 = vld [vmem:[#allocation2 + $0x28] sm:$0xf] }
  0x6d   : > { %v3605_v14 = vcombine.low %v812_v1, %v822_v7  ;;  %v835_v19 = vrot.slane %v833_v3, 5  ;;  %v839_v21 = vrot.slane %v837_v4, 4  ;;  %v845_v22 = vrot.slane %v843_v10, 5  ;;  %v1176_v45 = vld [vmem:[#allocation2 + $0x2c] sm:$0x1] }
  0x6e   : > { %v3622_v23 = vrot.slane %v1171_v0, 9  ;;  %v1232_v24 = vrot.slane %v1172_v6, 5  ;;  %3891 = vmatmul.mubr.msk.bf16.vlgmr.msra.gmra.mxu0 %vm606_vm9, %v3630_v15  ;;  %v830_v25 = vor.u32 %v829_v17, %v826_v9  ;;  %v1235_v26 = vrot.slane %v1173_v11, 5  ;;  %v760_v50 = vld [vmem:[#allocation2 + $0x30] sm:$0xf] }
  0x6f   : > { %3873 = vmatmul.mubr.msk.bf16.vlgmr.msra.gmra.mxu1 %vm606_vm9, %v3605_v14  ;;  %v848_v28 = vshrl.u32 %v757_v13, 16  ;;  %v851_v29 = vshll.u32 %v757_v13, 16  ;;  %3925 = vmatpush3.bf16.msra.mxu0 %v1967_v58  ;;  %v840_v30 = vor.u32 %v839_v21, %v835_v19  ;;  %v857_v34 = vshll.u32 %v758_v20, 16  ;;  %v761_v12 = vld [vmem:[#allocation2 + $0x34] sm:$0xf] }
  0x70   : > { %3907 = vmatpush3.bf16.msra.mxu1 %v1553_v57  ;;  %v1233_v32 = vsel %vm4372_vm14, %v3622_v23, %v1232_v24  ;;  %v1234_v33 = vrot.slane %v1232_v24, 4  ;;  %v831_v36 = vrot.slane %v830_v25, 4  ;;  %v861_v39 = vshrl.u32 %v758_v20, 16  ;;  %v762_v57 = vld [vmem:[#allocation2 + $0x38] sm:$0x1] }
  0x71   : > { %v850_v37 = vrot.slane %v848_v28, 4  ;;  %v853_v38 = vrot.slane %v851_v29, 5  ;;  %v841_v41 = vrot.slane %v840_v30, 4  ;;  %v859_v43 = vrot.slane %v857_v34, 5  ;;  %v1177_v58 = vld [vmem:[#allocation2 + $0x30] sm:$0xe] }
  0x72   : > { %v1236_v42 = vsel %vm4372_vm14, %v1234_v33, %v1235_v26  ;;  %v867_v44 = vshll.u32 %v759_v27, 16  ;;  %v836_v46 = vsel %vm4379_vm15, %v831_v36, %v835_v19  ;;  %v863_v49 = vrot.slane %v861_v39, 4  ;;  %v1178_v63 = vld [vmem:[#allocation2 + $0x34] sm:$0xf]  ;;  %v1179_v4 = vld [vmem:[#allocation2 + $0x38] sm:$0x1] }
  0x73   : > { %v3631_v47 = vcombine.low %v1233_v32, %v1236_v42  ;;  %v854_v48 = vor.u32 %v853_v38, %v850_v37  ;;  %v846_v51 = vsel %vm4379_vm15, %v841_v41, %v845_v22  ;;  %v3623_v53 = vrot.slane %v1174_v35, 9  ;;  %v763_v10 = vld [vmem:[#allocation2 + $0x3c] sm:$0xf]  ;;  %v764_v17 = vld [vmem:[#allocation2 + $0x40] sm:$0xf] }
  0x74   : > { %v869_v52 = vrot.slane %v867_v44, 5  ;;  %v1239_v5 = vrot.slane %v1175_v40, 5  ;;  %v3606_v16 = vcombine.low %v836_v46, %v846_v51  ;;  %v864_v55 = vor.u32 %v863_v49, %v859_v43  ;;  %v765_v23 = vld [vmem:[#allocation2 + $0x44] sm:$0x1]  ;;  %v1180_v28 = vld [vmem:[#allocation2 + $0x3c] sm:$0xe] }
  0x75   : > { %3894 = vmatprep.mubr.msk.bf16.mxu0 %vm606_vm9, %v3631_v47  ;;  %v855_v54 = vrot.slane %v854_v48, 4  ;;  %v1242_v56 = vrot.slane %v1176_v45, 5  ;;  %v872_v61 = vshrl.u32 %v760_v50, 16  ;;  %v875_v62 = vshll.u32 %v760_v50, 16  ;;  %v1181_v34 = vld [vmem:[#allocation2 + $0x40] sm:$0xf] }
  0x76   : > { %v1240_v59 = vsel %vm4372_vm14, %v3623_v53, %v1239_v5  ;;  %v1241_v60 = vrot.slane %v1239_v5, 4  ;;  %3876 = vmatprep.mubr.msk.bf16.mxu1 %vm606_vm9, %v3606_v16  ;;  %v865_v1 = vrot.slane %v864_v55, 4  ;;  %v881_v2 = vshll.u32 %v761_v12, 16  ;;  %v1182_v39 = vld [vmem:[#allocation2 + $0x44] sm:$0x1] }
  0x77   : > { %v860_v0 = vsel %vm4379_vm15, %v855_v54, %v859_v43  ;;  %v885_v3 = vshrl.u32 %v761_v12, 16  ;;  %v874_v7 = vrot.slane %v872_v61, 4  ;;  %v877_v8 = vrot.slane %v875_v62, 5  ;;  %v766_v44 = vld [vmem:[#allocation2 + $0x48] sm:$0xf] }
  0x78   : > { %v1243_v6 = vsel %vm4372_vm14, %v1241_v60, %v1242_v56  ;;  %v891_v9 = vshll.u32 %v762_v57, 16  ;;  %v870_v11 = vsel %vm4379_vm15, %v865_v1, %v869_v52  ;;  %v883_v14 = vrot.slane %v881_v2, 5  ;;  %v767_v49 = vld [vmem:[#allocation2 + $0x4c] sm:$0xf]  ;;  %v768_v5 = vld [vmem:[#allocation2 + $0x50] sm:$0x1] }
  0x79   : > { %v3632_v13 = vcombine.low %v1240_v59, %v1243_v6  ;;  %v887_v15 = vrot.slane %v885_v3, 4  ;;  %v3607_v19 = vcombine.low %v860_v0, %v870_v11  ;;  %v878_v20 = vor.u32 %v877_v8, %v874_v7  ;;  %v1183_v56 = vld [vmem:[#allocation2 + $0x48] sm:$0xe]  ;;  %v1184_v57 = vld [vmem:[#allocation2 + $0x4c] sm:$0xf] }
  0x7a   : > { %v893_v21 = vrot.slane %v891_v9, 5  ;;  %v3624_v22 = vrot.slane %v1177_v58, 9  ;;  %v1246_v25 = vrot.slane %v1178_v63, 5  ;;  %v1249_v26 = vrot.slane %v1179_v4, 5  ;;  %v1185_v62 = vld [vmem:[#allocation2 + $0x50] sm:$0x1] }
  0x7b   : > { %3895 = vmatmul.mubr.msk.bf16.gmra.mxu0 %vm606_vm9, %v3632_v13  ;;  %v888_v24 = vor.u32 %v887_v15, %v883_v14  ;;  %v896_v27 = vshrl.u32 %v763_v10, 16  ;;  %3877 = vmatmul.mubr.msk.bf16.gmra.mxu1 %vm606_vm9, %v3607_v19  ;;  %v879_v29 = vrot.slane %v878_v20, 4  ;;  %v899_v30 = vshll.u32 %v763_v10, 16  ;;  %v769_v3 = vld [vmem:[#allocation2 + $0x54] sm:$0xf] }
  0x7c   : > { %v905_v32 = vshll.u32 %v764_v17, 16  ;;  %v909_v33 = vshrl.u32 %v764_v17, 16  ;;  %v1247_v36 = vsel %vm4372_vm14, %v3624_v22, %v1246_v25  ;;  %v1248_v37 = vrot.slane %v1246_v25, 4  ;;  %v4454_v22 = vld [vmem:[%s5002_s1 + $0xa] sm:$0x3] }
  0x7d   : > { %v889_v35 = vrot.slane %v888_v24, 4  ;;  %v898_v38 = vrot.slane %v896_v27, 4  ;;  %v884_v40 = vsel %vm4379_vm15, %v879_v29, %v883_v14  ;;  %v901_v41 = vrot.slane %v899_v30, 5  ;;  %v770_v14 = vld [vmem:[#allocation2 + $0x58] sm:$0xf]  ;;  %4022 = vmatprep.subr.msk.bf16.mxu1 %vm631_vm8, %v4454_v22 }
  0x7e   : > { %v907_v42 = vrot.slane %v905_v32, 5  ;;  %v911_v43 = vrot.slane %v909_v33, 4  ;;  %v1250_v46 = vsel %vm4372_vm14, %v1248_v37, %v1249_v26  ;;  %v915_v47 = vshll.u32 %v765_v23, 16  ;;  %v1186_v27 = vld [vmem:[#allocation2 + $0x54] sm:$0xe] }
  0x7f   : > { %v894_v45 = vsel %vm4379_vm15, %v889_v35, %v893_v21  ;;  %v3625_v48 = vrot.slane %v1180_v28, 9  ;;  %v3633_v51 = vcombine.low %v1247_v36, %v1250_v46  ;;  %v902_v52 = vor.u32 %v901_v41, %v898_v38  ;;  %v771_v21 = vld [vmem:[#allocation2 + $0x5c] sm:$0x1]  ;;  %v4462_v28 = vld [vmem:[%s5002_s1 + $0xc] sm:$0x3] }
  0x80   : > { %v3608_v50 = vcombine.low %v884_v40, %v894_v45  ;;  %v912_v53 = vor.u32 %v911_v43, %v907_v42  ;;  %v917_v12 = vrot.slane %v915_v47, 5  ;;  %v1253_v16 = vrot.slane %v1181_v34, 5  ;;  %v1187_v34 = vld [vmem:[#allocation2 + $0x58] sm:$0xf]  ;;  %4023 = vmatprep.subr.msk.bf16.mxu0 %vm631_vm8, %v4462_v28  ;;  %v1188_v43 = vld [vmem:[#allocation2 + $0x5c] sm:$0x1] }
  0x81   : > { %v1256_v54 = vrot.slane %v1182_v39, 5  ;;  %v920_v55 = vshrl.u32 %v766_v44, 16  ;;  %3898 = vmatprep.mubr.msk.bf16.mxu0 %vm606_vm9, %v3633_v51  ;;  %v903_v58 = vrot.slane %v902_v52, 4  ;;  %v923_v60 = vshll.u32 %v766_v44, 16  ;;  %v1700_v44 = vld [vmem:[#allocation2 + $0xc] sm:$0xf] }
  0x82   : > { %3880 = vmatprep.mubr.msk.bf16.mxu1 %vm606_vm9, %v3608_v50  ;;  %v913_v59 = vrot.slane %v912_v53, 4  ;;  %v929_v61 = vshll.u32 %v767_v49, 16  ;;  %v1254_v63 = vsel %vm4372_vm14, %v3625_v48, %v1253_v16  ;;  %v1255_v0 = vrot.slane %v1253_v16, 4 }
  0x83   : > { %v922_v1 = vrot.slane %v920_v55, 4  ;;  %v933_v2 = vshrl.u32 %v767_v49, 16  ;;  %v908_v4 = vsel %vm4379_vm15, %v903_v58, %v907_v42  ;;  %v925_v7 = vrot.slane %v923_v60, 5  ;;  %v1701_v49 = vld [vmem:[#allocation2 + $0x10] sm:$0xf] }
  0x84   : > { %v918_v6 = vsel %vm4379_vm15, %v913_v59, %v917_v12  ;;  %v931_v8 = vrot.slane %v929_v61, 5  ;;  %v1257_v10 = vsel %vm4372_vm14, %v1255_v0, %v1256_v54  ;;  %v939_v13 = vshll.u32 %v768_v5, 16  ;;  %v1702_v5 = vld [vmem:[#allocation2 + $0x14] sm:$0x1]  ;;  %v1704_v61 = vld [vmem:[#allocation2 + $0x1c] sm:$0xf] }
  0x85   : > { %v3609_v9 = vcombine.low %v908_v4, %v918_v6  ;;  %v935_v11 = vrot.slane %v933_v2, 4  ;;  %v3634_v15 = vcombine.low %v1254_v63, %v1257_v10  ;;  %v926_v17 = vor.u32 %v925_v7, %v922_v1 }
  0x86   : > { %v3626_v19 = vrot.slane %v1183_v56, 9  ;;  %v1260_v20 = vrot.slane %v1184_v57, 5  ;;  %v941_v24 = vrot.slane %v939_v13, 5  ;;  %v1263_v25 = vrot.slane %v1185_v62, 5  ;;  %v1703_v56 = vld [vmem:[#allocation2 + $0x18] sm:$0xf] }
  0x87   : > { %3881 = vmatmul.mubr.msk.bf16.gmra.mxu1 %vm606_vm9, %v3609_v9  ;;  %v936_v23 = vor.u32 %v935_v11, %v931_v8  ;;  %v944_v26 = vshrl.u32 %v769_v3, 16  ;;  %3899 = vmatmul.mubr.msk.bf16.gmra.mxu0 %vm606_vm9, %v3634_v15  ;;  %v927_v29 = vrot.slane %v926_v17, 4  ;;  %v947_v33 = vshll.u32 %v769_v3, 16  ;;  %v4075_v9 = vld [vmem:[#allocation2 + $0xc] sm:$0xff]   ;;  %v1705_v11 = vld [vmem:[#allocation2 + $0x20] sm:$0x1] }
  0x88   : > { %v1261_v30 = vsel %vm4372_vm14, %v3626_v19, %v1260_v20  ;;  %v1262_v32 = vrot.slane %v1260_v20, 4  ;;  %v953_v37 = vshll.u32 %v770_v14, 16  ;;  %v957_v38 = vshrl.u32 %v770_v14, 16  ;;  %v1706_v20 = vld [vmem:[#allocation2 + $0x24] sm:$0xf] }
  0x89   : > { %v937_v35 = vrot.slane %v936_v23, 4  ;;  %v946_v36 = vrot.slane %v944_v26, 4  ;;  %v932_v39 = vsel %vm4379_vm15, %v927_v29, %v931_v8  ;;  %v949_v41 = vrot.slane %v947_v33, 5  ;;  %v1707_v26 = vld [vmem:[#allocation2 + $0x28] sm:$0xf] }
  0x8a   : > { %v1264_v40 = vsel %vm4372_vm14, %v1262_v32, %v1263_v25  ;;  %v963_v42 = vshll.u32 %v771_v21, 16  ;;  %v955_v47 = vrot.slane %v953_v37, 5  ;;  %v959_v48 = vrot.slane %v957_v38, 4  ;;  %v1708_v33 = vld [vmem:[#allocation2 + $0x2c] sm:$0x1] }
  0x8b   : > { %v942_v45 = vsel %vm4379_vm15, %v937_v35, %v941_v24  ;;  %v3635_v46 = vcombine.low %v1261_v30, %v1264_v40  ;;  %v950_v51 = vor.u32 %v949_v41, %v946_v36  ;;  %v3627_v53 = vrot.slane %v1186_v27, 9  ;;  %v1709_v38 = vld [vmem:[#allocation2 + $0x30] sm:$0xf] }
  0x8c   : > { %v3610_v50 = vcombine.low %v932_v39, %v942_v45  ;;  %v965_v52 = vrot.slane %v963_v42, 5  ;;  %v960_v12 = vor.u32 %v959_v48, %v955_v47  ;;  %v1267_v16 = vrot.slane %v1187_v34, 5  ;;  %v1710_v48 = vld [vmem:[#allocation2 + $0x34] sm:$0xf] }
  0x8d   : > { %3902 = vmatprep.mubr.msk.bf16.mxu0 %vm606_vm9, %v3635_v46  ;;  %v1270_v54 = vrot.slane %v1188_v43, 5  ;;  %v1725_v55 = vshrl.u32 %v1700_v44, 16  ;;  %v951_v57 = vrot.slane %v950_v51, 4  ;;  %v1728_v58 = vshll.u32 %v1700_v44, 16  ;;  %v4076_v44 = vld [vmem:[#allocation2 + $0x18] sm:$0xff]  }
  0x8e   : > { %3884 = vmatprep.mubr.msk.bf16.mxu1 %vm606_vm9, %v3610_v50  ;;  %v1734_v59 = vshll.u32 %v1701_v49, 16  ;;  %v1738_v60 = vshrl.u32 %v1701_v49, 16  ;;  %v961_v62 = vrot.slane %v960_v12, 4  ;;  %v1268_v63 = vsel %vm4372_vm14, %v3627_v53, %v1267_v16 }
  0x8f   : > { %v1269_v0 = vrot.slane %v1267_v16, 4  ;;  %v1727_v1 = vrot.slane %v1725_v55, 4  ;;  %v956_v2 = vsel %vm4379_vm15, %v951_v57, %v955_v47  ;;  %v1730_v3 = vrot.slane %v1728_v58, 5 }
  0x90   : > { %v1736_v4 = vrot.slane %v1734_v59, 5  ;;  %v1740_v6 = vrot.slane %v1738_v60, 4  ;;  %v966_v7 = vsel %vm4379_vm15, %v961_v62, %v965_v52  ;;  %v1744_v10 = vshll.u32 %v1702_v5, 16  ;;  %v1711_v52 = vld [vmem:[#allocation2 + $0x38] sm:$0x1] }
  0x91   : > { %v1271_v8 = vsel %vm4372_vm14, %v1269_v0, %v1270_v54  ;;  %v1749_v13 = vshrl.u32 %v1703_v56, 16  ;;  %v3611_v14 = vcombine.low %v956_v2, %v966_v7  ;;  %v1731_v17 = vor.u32 %v1730_v3, %v1727_v1  ;;  %v1712_v62 = vld [vmem:[#allocation2 + $0x3c] sm:$0xf]  ;;  %v1713_v3 = vld [vmem:[#allocation2 + $0x40] sm:$0xf] }
  0x92   : > { %v3636_v15 = vcombine.low %v1268_v63, %v1271_v8  ;;  %v1741_v19 = vor.u32 %v1740_v6, %v1736_v4  ;;  %v1746_v21 = vrot.slane %v1744_v10, 5  ;;  %v1752_v24 = vshll.u32 %v1703_v56, 16 }
  0x93   : > { %v1751_v23 = vrot.slane %v1749_v13, 4  ;;  %v1758_v25 = vshll.u32 %v1704_v61, 16  ;;  %3885 = vmatmul.mubr.msk.bf16.gmra.mxu1 %vm606_vm9, %v3611_v14  ;;  %v1732_v27 = vrot.slane %v1731_v17, 4  ;;  %v1762_v30 = vshrl.u32 %v1704_v61, 16 }
  0x94   : > { %3903 = vmatmul.mubr.msk.bf16.gmra.mxu0 %vm606_vm9, %v3636_v15  ;;  %v1742_v29 = vrot.slane %v1741_v19, 4  ;;  %v1768_v32 = vshll.u32 %v1705_v11, 16  ;;  %3908 = vmatprep.mubr.msk.bf16.mxu1 %vm606_vm9, %v4075_v9  ;;  %v1754_v34 = vrot.slane %v1752_v24, 5  ;;  %v2269_v36 = vsel %vm631_vm8, %v4454_v22, 0  ;;  %v4077_v22 = vld [vmem:[#allocation2 + $0x24] sm:$0xff]   ;;  %v4078_v24 = vld [vmem:[#allocation2 + $0x30] sm:$0xff]  }
  0x95   : > { %v1760_v35 = vrot.slane %v1758_v25, 5  ;;  %v2500_v37 = vsel %vm631_vm8, %v4462_v28, 0  ;;  %v1737_v39 = vsel %vm4379_vm15, %v1732_v27, %v1736_v4  ;;  %v1764_v41 = vrot.slane %v1762_v30, 4  ;;  %v1714_v9 = vld [vmem:[#allocation2 + $0x44] sm:$0x1] }
  0x96   : > { %v1747_v40 = vsel %vm4379_vm15, %v1742_v29, %v1746_v21  ;;  %v1770_v42 = vrot.slane %v1768_v32, 5  ;;  %v1755_v45 = vor.u32 %v1754_v34, %v1751_v23  ;;  %v1773_v46 = vshrl.u32 %v1706_v20, 16  ;;  %v1715_v15 = vld [vmem:[#allocation2 + $0x48] sm:$0xf]  ;;  %v1716_v29 = vld [vmem:[#allocation2 + $0x4c] sm:$0xf] }
  0x97   : > { %v3663_v43 = vcombine.low %v1737_v39, %v1747_v40  ;;  %v1776_v47 = vshll.u32 %v1706_v20, 16  ;;  %v1765_v49 = vor.u32 %v1764_v41, %v1760_v35  ;;  %v1782_v50 = vshll.u32 %v1707_v26, 16 }
  0x98   : > { %v1786_v51 = vshrl.u32 %v1707_v26, 16  ;;  %v1792_v28 = vshll.u32 %v1708_v33, 16  ;;  %v1756_v53 = vrot.slane %v1755_v45, 4  ;;  %v1775_v5 = vrot.slane %v1773_v46, 4  ;;  %v4079_v33 = vld [vmem:[#allocation2 + $0x3c] sm:$0xff]  }
  0x99   : > { %3926 = vmatprep.mubr.msk.bf16.mxu0 %vm606_vm9, %v3663_v43  ;;  %v1778_v12 = vrot.slane %v1776_v47, 5  ;;  %v1797_v16 = vshrl.u32 %v1709_v38, 16  ;;  %v1766_v54 = vrot.slane %v1765_v49, 4  ;;  %v1784_v55 = vrot.slane %v1782_v50, 5  ;;  %v4514_v46 = vld [vmem:[%s5002_s1 + $0xe] sm:$0x3] }
  0x9a   : > { %v1788_v56 = vrot.slane %v1786_v51, 4  ;;  %v1794_v57 = vrot.slane %v1792_v28, 5  ;;  %v1761_v58 = vsel %vm4379_vm15, %v1756_v53, %v1760_v35  ;;  %v1800_v61 = vshll.u32 %v1709_v38, 16  ;;  %v1718_v38 = vld [vmem:[#allocation2 + $0x54] sm:$0xf] }
  0x9b   : > { %v1779_v59 = vor.u32 %v1778_v12, %v1775_v5  ;;  %v1799_v60 = vrot.slane %v1797_v16, 4  ;;  %3909 = vmatmul.mubr.msk.bf16.vlgmr.msra.gmra.mxu1 %vm606_vm9, %v4076_v44  ;;  %v1771_v63 = vsel %vm4379_vm15, %v1766_v54, %v1770_v42  ;;  %v1806_v1 = vshll.u32 %v1710_v48, 16  ;;  %v4524_v50 = vld [vmem:[%s5002_s1 + $0x10] sm:$0x3]  ;;  %v1719_v5 = vld [vmem:[#allocation2 + $0x58] sm:$0xf] }
  0x9c   : > { %v1789_v0 = vor.u32 %v1788_v56, %v1784_v55  ;;  %v1810_v2 = vshrl.u32 %v1710_v48, 16  ;;  %v3664_v4 = vcombine.low %v1761_v58, %v1771_v63  ;;  %3943 = vmatpush3.bf16.msra.mxu1 %v2269_v36  ;;  %3912 = vmatprep.mubr.msk.bf16.mxu1 %vm606_vm9, %v4077_v22  ;;  %v1802_v7 = vrot.slane %v1800_v61, 5  ;;  %v1717_v36 = vld [vmem:[#allocation2 + $0x50] sm:$0x1]  ;;  %v4080_v12 = vld [vmem:[#allocation2 + $0x48] sm:$0xff]  }
  0x9d   : > { %v1780_v6 = vrot.slane %v1779_v59, 4  ;;  %v1816_v8 = vshll.u32 %v1711_v52, 16  ;;  %v1808_v11 = vrot.slane %v1806_v1, 5  ;;  %v1821_v14 = vshrl.u32 %v1712_v62, 16  ;;  %4024 = vmatprep.subr.msk.bf16.mxu1 %vm631_vm8, %v4514_v46  ;;  %v1720_v56 = vld [vmem:[#allocation2 + $0x5c] sm:$0x1] }
  0x9e   : > { %v1790_v10 = vrot.slane %v1789_v0, 4  ;;  %v1812_v13 = vrot.slane %v1810_v2, 4  ;;  %3927 = vmatmul.mubr.msk.bf16.vlgmr.msra.gmra.mxu0 %vm606_vm9, %v3664_v4  ;;  %v1803_v19 = vor.u32 %v1802_v7, %v1799_v60  ;;  %v1824_v21 = vshll.u32 %v1712_v62, 16  ;;  %v1721_v2 = vld [vmem:[#allocation2 + $0x60] sm:$0xf] }
  0x9f   : > { %v1785_v17 = vsel %vm4379_vm15, %v1780_v6, %v1784_v55  ;;  %v1818_v20 = vrot.slane %v1816_v8, 5  ;;  %3961 = vmatpush3.bf16.msra.mxu0 %v2500_v37  ;;  %v1823_v26 = vrot.slane %v1821_v14, 4  ;;  %v1830_v27 = vshll.u32 %v1713_v3, 16  ;;  %v4081_v6 = vld [vmem:[#allocation2 + $0x54] sm:$0xff]  }
  0xa0   : > { %v1795_v23 = vsel %vm4379_vm15, %v1790_v10, %v1794_v57  ;;  %v1813_v25 = vor.u32 %v1812_v13, %v1808_v11  ;;  %v1804_v32 = vrot.slane %v1803_v19, 4  ;;  %v1826_v34 = vrot.slane %v1824_v21, 5  ;;  %4025 = vmatprep.subr.msk.bf16.mxu0 %vm631_vm8, %v4524_v50 }
  0xa1   : > { %v3665_v30 = vcombine.low %v1785_v17, %v1795_v23  ;;  %v1834_v35 = vshrl.u32 %v1713_v3, 16  ;;  %v1832_v40 = vrot.slane %v1830_v27, 5  ;;  %v1840_v41 = vshll.u32 %v1714_v9, 16  ;;  %v1722_v9 = vld [vmem:[#allocation2 + $0x64] sm:$0xf] }
  0xa2   : > { %v1814_v39 = vrot.slane %v1813_v25, 4  ;;  %v1845_v42 = vshrl.u32 %v1715_v15, 16  ;;  %v1809_v37 = vsel %vm4379_vm15, %v1804_v32, %v1808_v11  ;;  %v1827_v43 = vor.u32 %v1826_v34, %v1823_v26  ;;  %v2114_v23 = vld [vmem:[#allocation2 + $0xc] sm:$0xe] }
  0xa3   : > { %3930 = vmatprep.mubr.msk.bf16.mxu0 %vm606_vm9, %v3665_v30  ;;  %v1836_v44 = vrot.slane %v1834_v35, 4  ;;  %v1848_v45 = vshll.u32 %v1715_v15, 16  ;;  %3913 = vmatmul.mubr.msk.bf16.gmra.mxu1 %vm606_vm9, %v4078_v24  ;;  %v1842_v48 = vrot.slane %v1840_v41, 5  ;;  %v1854_v22 = vshll.u32 %v1716_v29, 16  ;;  %v1723_v15 = vld [vmem:[#allocation2 + $0x68] sm:$0x1] }
  0xa4   : > { %v1819_v47 = vsel %vm4379_vm15, %v1814_v39, %v1818_v20  ;;  %v1847_v49 = vrot.slane %v1845_v42, 4  ;;  %3916 = vmatprep.mubr.msk.bf16.mxu1 %vm606_vm9, %v4079_v33  ;;  %v1828_v28 = vrot.slane %v1827_v43, 4  ;;  %v1858_v54 = vshrl.u32 %v1716_v29, 16  ;;  %v2115_v24 = vld [vmem:[#allocation2 + $0x10] sm:$0xf] }
  0xa5   : > { %v3666_v51 = vcombine.low %v1809_v37, %v1819_v47  ;;  %v1837_v52 = vor.u32 %v1836_v44, %v1832_v40  ;;  %v1850_v53 = vrot.slane %v1848_v45, 5  ;;  %v1856_v16 = vrot.slane %v1854_v22, 5  ;;  %v2116_v30 = vld [vmem:[#allocation2 + $0x14] sm:$0x1]  ;;  %v2118_v42 = vld [vmem:[#allocation2 + $0x1c] sm:$0xf] }
  0xa6   : > { %v1864_v55 = vshll.u32 %v1717_v36, 16  ;;  %v1869_v57 = vshrl.u32 %v1718_v38, 16  ;;  %v1833_v58 = vsel %vm4379_vm15, %v1828_v28, %v1832_v40  ;;  %v1872_v61 = vshll.u32 %v1718_v38, 16  ;;  %v2117_v36 = vld [vmem:[#allocation2 + $0x18] sm:$0xe] }
  0xa7   : > { %3931 = vmatmul.mubr.msk.bf16.gmra.mxu0 %vm606_vm9, %v3666_v51  ;;  %v1838_v59 = vrot.slane %v1837_v52, 4  ;;  %v1851_v60 = vor.u32 %v1850_v53, %v1847_v49  ;;  %v1860_v62 = vrot.slane %v1858_v54, 4  ;;  %v1878_v1 = vshll.u32 %v1719_v5, 16  ;;  %v2119_v47 = vld [vmem:[#allocation2 + $0x20] sm:$0x1] }
  0xa8   : > { %v1866_v63 = vrot.slane %v1864_v55, 5  ;;  %v1871_v0 = vrot.slane %v1869_v57, 4  ;;  %v1874_v7 = vrot.slane %v1872_v61, 5  ;;  %v1882_v8 = vshrl.u32 %v1719_v5, 16  ;;  %v2120_v52 = vld [vmem:[#allocation2 + $0x24] sm:$0xe] }
  0xa9   : > { %v1843_v3 = vsel %vm4379_vm15, %v1838_v59, %v1842_v48  ;;  %v1852_v4 = vrot.slane %v1851_v60, 4  ;;  %v1861_v11 = vor.u32 %v1860_v62, %v1856_v16  ;;  %v1880_v13 = vrot.slane %v1878_v1, 5  ;;  %v4082_v48 = vld [vmem:[#allocation2 + $0x60] sm:$0xff]   ;;  %v2121_v54 = vld [vmem:[#allocation2 + $0x28] sm:$0xf] }
  0xaa   : > { %v3667_v10 = vcombine.low %v1833_v58, %v1843_v3  ;;  %v1888_v14 = vshll.u32 %v1720_v56, 16  ;;  %v1875_v19 = vor.u32 %v1874_v7, %v1871_v0  ;;  %v1884_v20 = vrot.slane %v1882_v8, 4  ;;  %v2122_v55 = vld [vmem:[#allocation2 + $0x2c] sm:$0x1]  ;;  %v2123_v56 = vld [vmem:[#allocation2 + $0x30] sm:$0xe] }
  0xab   : > { %v1857_v17 = vsel %vm4379_vm15, %v1852_v4, %v1856_v16  ;;  %v1893_v21 = vshrl.u32 %v1721_v2, 16  ;;  %3917 = vmatmul.mubr.msk.bf16.gmra.mxu1 %vm606_vm9, %v4080_v12  ;;  %v1862_v25 = vrot.slane %v1861_v11, 4  ;;  %v1896_v27 = vshll.u32 %v1721_v2, 16  ;;  %v2124_v61 = vld [vmem:[#allocation2 + $0x34] sm:$0xf] }
  0xac   : > { %3934 = vmatprep.mubr.msk.bf16.mxu0 %vm606_vm9, %v3667_v10  ;;  %v1890_v26 = vrot.slane %v1888_v14, 5  ;;  %v1902_v29 = vshll.u32 %v1722_v9, 16  ;;  %3920 = vmatprep.mubr.msk.bf16.mxu1 %vm606_vm9, %v4081_v6  ;;  %v1876_v32 = vrot.slane %v1875_v19, 4  ;;  %v1885_v33 = vor.u32 %v1884_v20, %v1880_v13  ;;  %v2125_v62 = vld [vmem:[#allocation2 + $0x38] sm:$0x1] }
  0xad   : > { %v1895_v34 = vrot.slane %v1893_v21, 4  ;;  %v1906_v35 = vshrl.u32 %v1722_v9, 16  ;;  %v1867_v38 = vsel %vm4379_vm15, %v1862_v25, %v1866_v63  ;;  %v1898_v39 = vrot.slane %v1896_v27, 5  ;;  %v2126_v63 = vld [vmem:[#allocation2 + $0x3c] sm:$0xe] }
  0xae   : > { %v1904_v40 = vrot.slane %v1902_v29, 5  ;;  %v1912_v41 = vshll.u32 %v1723_v15, 16  ;;  %v3668_v37 = vcombine.low %v1857_v17, %v1867_v38  ;;  %v1881_v43 = vsel %vm4379_vm15, %v1876_v32, %v1880_v13  ;;  %v2127_v4 = vld [vmem:[#allocation2 + $0x40] sm:$0xf]  ;;  %v2128_v10 = vld [vmem:[#allocation2 + $0x44] sm:$0x1] }
  0xaf   : > { %v1886_v44 = vrot.slane %v1885_v33, 4  ;;  %v1908_v45 = vrot.slane %v1906_v35, 4  ;;  %v1899_v49 = vor.u32 %v1898_v39, %v1895_v34  ;;  %v3679_v51 = vrot.slane %v2114_v23, 9  ;;  %v2129_v11 = vld [vmem:[#allocation2 + $0x48] sm:$0xe]  ;;  %v4083_v20 = vld [vmem:[#allocation2 + $0x18] sm:$0xff]  }
  0xb0   : > { %v1914_v22 = vrot.slane %v1912_v41, 5  ;;  %v2164_v28 = vrot.slane %v2115_v24, 5  ;;  %3935 = vmatmul.mubr.msk.bf16.gmra.mxu0 %vm606_vm9, %v3668_v37  ;;  %v2167_v12 = vrot.slane %v2116_v30, 5  ;;  %v3680_v16 = vrot.slane %v2117_v36, 9  ;;  %v2130_v17 = vld [vmem:[#allocation2 + $0x4c] sm:$0xf] }
  0xb1   : > { %v1891_v53 = vsel %vm4379_vm15, %v1886_v44, %v1890_v26  ;;  %v1909_v5 = vor.u32 %v1908_v45, %v1904_v40  ;;  %v1900_v58 = vrot.slane %v1899_v49, 4  ;;  %v2171_v1 = vrot.slane %v2118_v42, 5  ;;  %v2131_v25 = vld [vmem:[#allocation2 + $0x50] sm:$0x1]  ;;  %v2132_v30 = vld [vmem:[#allocation2 + $0x54] sm:$0xe] }
  0xb2   : > { %v3669_v57 = vcombine.low %v1881_v43, %v1891_v53  ;;  %v2165_v59 = vsel %vm4372_vm14, %v3679_v51, %v2164_v28  ;;  %v2166_v60 = vrot.slane %v2164_v28, 4  ;;  %v2174_v2 = vrot.slane %v2119_v47, 5  ;;  %v2133_v36 = vld [vmem:[#allocation2 + $0x58] sm:$0xf]  ;;  %v2134_v42 = vld [vmem:[#allocation2 + $0x5c] sm:$0x1] }
  0xb3   : > { %v1910_v0 = vrot.slane %v1909_v5, 4  ;;  %v2914_v3 = vsel %vm631_vm8, %v4514_v46, 0  ;;  %3921 = vmatmul.mubr.msk.bf16.gmra.mxu1 %vm606_vm9, %v4082_v48  ;;  %v1905_v6 = vsel %vm4379_vm15, %v1900_v58, %v1904_v40  ;;  %v4558_v8 = vsel %vm631_vm8, %v4524_v50, 0  ;;  %v2135_v45 = vld [vmem:[#allocation2 + $0x60] sm:$0xe] }
  0xb4   : > { %3938 = vmatprep.mubr.msk.bf16.mxu0 %vm606_vm9, %v3669_v57  ;;  %v2168_v7 = vsel %vm4372_vm14, %v2166_v60, %v2167_v12  ;;  %v3681_v9 = vrot.slane %v2120_v52, 9  ;;  %v2172_v14 = vsel %vm4372_vm14, %v3680_v16, %v2171_v1  ;;  %v2173_v15 = vrot.slane %v2171_v1, 4  ;;  %v2136_v47 = vld [vmem:[#allocation2 + $0x64] sm:$0xf]  ;;  %v2137_v28 = vld [vmem:[#allocation2 + $0x68] sm:$0x1] }
  0xb5   : > { %v1915_v46 = vsel %vm4379_vm15, %v1910_v0, %v1914_v22  ;;  %v3688_v13 = vcombine.low %v2165_v59, %v2168_v7  ;;  %v2178_v21 = vrot.slane %v2121_v54, 5  ;;  %v2181_v23 = vrot.slane %v2122_v55, 5  ;;  %v2647_v52 = vld [vmem:[#allocation2 + $0x18] sm:$0xf]  ;;  %v4084_v54 = vld [vmem:[#allocation2 + $0x24] sm:$0xff]   ;;  %v4085_v60 = vld [vmem:[#allocation2 + $0x30] sm:$0xff]  }
  0xb6   : > { %v3670_v19 = vcombine.low %v1905_v6, %v1915_v46  ;;  %v3682_v24 = vrot.slane %v2123_v56, 9  ;;  %v2175_v50 = vsel %vm4372_vm14, %v2173_v15, %v2174_v2  ;;  %v2185_v26 = vrot.slane %v2124_v61, 5  ;;  %v2648_v59 = vld [vmem:[#allocation2 + $0x1c] sm:$0xf]  ;;  %v2649_v0 = vld [vmem:[#allocation2 + $0x20] sm:$0x1] }
  0xb7   : > { %3944 = vmatprep.mubr.msk.bf16.mxu1 %vm606_vm9, %v3688_v13  ;;  %v2188_v27 = vrot.slane %v2125_v62, 5  ;;  %v3683_v29 = vrot.slane %v2126_v63, 9  ;;  %v3689_v32 = vcombine.low %v2172_v14, %v2175_v50  ;;  %v2179_v33 = vsel %vm4372_vm14, %v3681_v9, %v2178_v21  ;;  %v3061_v7 = vld [vmem:[#allocation2 + $0x18] sm:$0xe]  ;;  %v3062_v9 = vld [vmem:[#allocation2 + $0x1c] sm:$0xf] }
  0xb8   : > { %v2180_v34 = vrot.slane %v2178_v21, 4  ;;  %v2192_v35 = vrot.slane %v2127_v4, 5  ;;  %3939 = vmatmul.mubr.msk.bf16.gmra.mxu0 %vm606_vm9, %v3670_v19  ;;  %v4572_v38 = vsel %vm4372_vm14, %v3682_v24, %v2185_v26  ;;  %v2187_v39 = vrot.slane %v2185_v26, 4  ;;  %v3063_v14 = vld [vmem:[#allocation2 + $0x20] sm:$0x1] }
  0xb9   : > { %v2195_v40 = vrot.slane %v2128_v10, 5  ;;  %v3684_v41 = vrot.slane %v2129_v11, 9  ;;  %3962 = vmatprep.mubr.msk.bf16.mxu0 %vm606_vm9, %v4083_v20  ;;  %v2199_v44 = vrot.slane %v2130_v17, 5  ;;  %v2202_v22 = vrot.slane %v2131_v25, 5  ;;  %v2650_v21 = vld [vmem:[#allocation2 + $0x24] sm:$0xf] }
  0xba   : > { %v2182_v37 = vsel %vm4372_vm14, %v2180_v34, %v2181_v23  ;;  %v2194_v43 = vrot.slane %v2192_v35, 4  ;;  %v2189_v49 = vsel %vm4372_vm14, %v2187_v39, %v2188_v27  ;;  %v3685_v51 = vrot.slane %v2132_v30, 9  ;;  %v2651_v26 = vld [vmem:[#allocation2 + $0x28] sm:$0xf]  ;;  %v2652_v34 = vld [vmem:[#allocation2 + $0x2c] sm:$0x1] }
  0xbb   : > { %v3690_v48 = vcombine.low %v2179_v33, %v2182_v37  ;;  %3945 = vmatmul.mubr.msk.bf16.vlgmr.msra.gmra.mxu1 %vm606_vm9, %v3689_v32  ;;  %v3691_v53 = vcombine.low %v4572_v38, %v2189_v49  ;;  %v2193_v5 = vsel %vm4372_vm14, %v3683_v29, %v2192_v35  ;;  %v2201_v16 = vrot.slane %v2199_v44, 4  ;;  %v4086_v38 = vld [vmem:[#allocation2 + $0x3c] sm:$0xff]   ;;  %v3064_v37 = vld [vmem:[#allocation2 + $0x24] sm:$0xe]  ;;  %v3065_v49 = vld [vmem:[#allocation2 + $0x28] sm:$0xf] }
  0xbc   : > { %v2196_v12 = vsel %vm4372_vm14, %v2194_v43, %v2195_v40  ;;  %3979 = vmatpush3.bf16.msra.mxu1 %v2914_v3  ;;  %v4588_v55 = vsel %vm4372_vm14, %v3684_v41, %v2199_v44  ;;  %v2206_v56 = vrot.slane %v2133_v36, 5  ;;  %v2209_v57 = vrot.slane %v2134_v42, 5  ;;  %v4087_v43 = vld [vmem:[#allocation2 + $0x48] sm:$0xff]  }
  0xbd   : > { %3948 = vmatprep.mubr.msk.bf16.mxu1 %vm606_vm9, %v3690_v48  ;;  %v3686_v58 = vrot.slane %v2135_v45, 9  ;;  %v4592_v61 = vsel %vm4372_vm14, %v2201_v16, %v2202_v22  ;;  %v2213_v62 = vrot.slane %v2136_v47, 5  ;;  %v2216_v63 = vrot.slane %v2137_v28, 5 }
  0xbe   : > { %v2672_v1 = vshrl.u32 %v2647_v52, 16  ;;  %v3692_v2 = vcombine.low %v2193_v5, %v2196_v12  ;;  %v4596_v3 = vsel %vm4372_vm14, %v3685_v51, %v2206_v56  ;;  %v2208_v4 = vrot.slane %v2206_v56, 4  ;;  %v2653_v56 = vld [vmem:[#allocation2 + $0x30] sm:$0xf] }
  0xbf   : > { %v2675_v6 = vshll.u32 %v2647_v52, 16  ;;  %v3693_v10 = vcombine.low %v4588_v55, %v4592_v61  ;;  %v2215_v11 = vrot.slane %v2213_v62, 4  ;;  %v2681_v13 = vshll.u32 %v2648_v59, 16 }
  0xc0   : > { %v2674_v46 = vrot.slane %v2672_v1, 4  ;;  %3963 = vmatmul.mubr.msk.bf16.vlgmr.msra.gmra.mxu0 %vm606_vm9, %v4084_v54  ;;  %v4603_v15 = vsel %vm4372_vm14, %v2208_v4, %v2209_v57  ;;  %v2685_v19 = vshrl.u32 %v2648_v59, 16  ;;  %v2691_v20 = vshll.u32 %v2649_v0, 16 }
  0xc1   : > { %v2677_v17 = vrot.slane %v2675_v6, 5  ;;  %3997 = vmatpush3.bf16.msra.mxu0 %v4558_v8  ;;  %3966 = vmatprep.mubr.msk.bf16.mxu0 %vm606_vm9, %v4085_v60  ;;  %v3694_v23 = vcombine.low %v4596_v3, %v4603_v15  ;;  %v4611_v24 = vsel %vm4372_vm14, %v3686_v58, %v2213_v62  ;;  %v4615_v25 = vsel %vm4372_vm14, %v2215_v11, %v2216_v63  ;;  %v2654_v62 = vld [vmem:[#allocation2 + $0x34] sm:$0xf]  ;;  %v2655_v3 = vld [vmem:[#allocation2 + $0x38] sm:$0x1] }
  0xc2   : > { %v2683_v50 = vrot.slane %v2681_v13, 5  ;;  %v2687_v29 = vrot.slane %v2685_v19, 4  ;;  %v2693_v30 = vrot.slane %v2691_v20, 5  ;;  %v3738_v32 = vrot.slane %v3061_v7, 9  ;;  %v3067_v11 = vld [vmem:[#allocation2 + $0x30] sm:$0xe] }
  0xc3   : > { %v2678_v27 = vor.u32 %v2677_v17, %v2674_v46  ;;  %3949 = vmatmul.mubr.msk.bf16.gmra.mxu1 %vm606_vm9, %v3691_v53  ;;  %v3111_v8 = vrot.slane %v3062_v9, 5  ;;  %v3114_v33 = vrot.slane %v3063_v14, 5  ;;  %v2696_v35 = vshrl.u32 %v2650_v21, 16  ;;  %v3066_v53 = vld [vmem:[#allocation2 + $0x2c] sm:$0x1]  ;;  %v4088_v46 = vld [vmem:[#allocation2 + $0x54] sm:$0xff]  }
  0xc4   : > { %v2699_v36 = vshll.u32 %v2650_v21, 16  ;;  %3952 = vmatprep.mubr.msk.bf16.mxu1 %vm606_vm9, %v3692_v2  ;;  %v2688_v40 = vor.u32 %v2687_v29, %v2683_v50  ;;  %v2705_v41 = vshll.u32 %v2651_v26, 16  ;;  %v2709_v42 = vshrl.u32 %v2651_v26, 16  ;;  %v3068_v19 = vld [vmem:[#allocation2 + $0x34] sm:$0xf]  ;;  %v4089_v26 = vld [vmem:[#allocation2 + $0x60] sm:$0xff]  }
  0xc5   : > { %v2679_v39 = vrot.slane %v2678_v27, 4  ;;  %v3695_v44 = vcombine.low %v4611_v24, %v4615_v25  ;;  %v3113_v45 = vrot.slane %v3111_v8, 4  ;;  %v2698_v47 = vrot.slane %v2696_v35, 4 }
  0xc6   : > { %v2701_v48 = vrot.slane %v2699_v36, 5  ;;  %v2689_v22 = vrot.slane %v2688_v40, 4  ;;  %v4623_v51 = vsel %vm4372_vm14, %v3738_v32, %v3111_v8  ;;  %v2707_v28 = vrot.slane %v2705_v41, 5  ;;  %v2657_v32 = vld [vmem:[#allocation2 + $0x40] sm:$0xf] }
  0xc7   : > { %v2711_v52 = vrot.slane %v2709_v42, 4  ;;  %v2684_v5 = vsel %vm4379_vm15, %v2679_v39, %v2683_v50  ;;  %v4629_v12 = vsel %vm4372_vm14, %v3113_v45, %v3114_v33  ;;  %v2715_v54 = vshll.u32 %v2652_v34, 16  ;;  %v2656_v50 = vld [vmem:[#allocation2 + $0x3c] sm:$0xf]  ;;  %v2658_v39 = vld [vmem:[#allocation2 + $0x44] sm:$0x1] }
  0xc8   : > { %v2702_v16 = vor.u32 %v2701_v48, %v2698_v47  ;;  %3967 = vmatmul.mubr.msk.bf16.gmra.mxu0 %vm606_vm9, %v4086_v38  ;;  %v2694_v57 = vsel %vm4379_vm15, %v2689_v22, %v2693_v30  ;;  %v3739_v59 = vrot.slane %v3064_v37, 9  ;;  %v3118_v60 = vrot.slane %v3065_v49, 5  ;;  %v3070_v47 = vld [vmem:[#allocation2 + $0x3c] sm:$0xe] }
  0xc9   : > { %v2712_v58 = vor.u32 %v2711_v52, %v2707_v28  ;;  %3970 = vmatprep.mubr.msk.bf16.mxu0 %vm606_vm9, %v4087_v43  ;;  %v3747_v63 = vcombine.low %v4623_v51, %v4629_v12  ;;  %v2717_v1 = vrot.slane %v2715_v54, 5  ;;  %v3121_v2 = vrot.slane %v3066_v53, 5  ;;  %v3071_v52 = vld [vmem:[#allocation2 + $0x40] sm:$0xf] }
  0xca   : > { %v2703_v0 = vrot.slane %v2702_v16, 4  ;;  %v3722_v4 = vcombine.low %v2684_v5, %v2694_v57  ;;  %v3120_v7 = vrot.slane %v3118_v60, 4  ;;  %v2720_v9 = vshrl.u32 %v2653_v56, 16  ;;  %v4090_v57 = vld [vmem:[#allocation2 + $0x6c] sm:$0xff]  }
  0xcb   : > { %v2713_v6 = vrot.slane %v2712_v58, 4  ;;  %3953 = vmatmul.mubr.msk.bf16.gmra.mxu1 %vm606_vm9, %v3693_v10  ;;  %v2723_v14 = vshll.u32 %v2653_v56, 16  ;;  %v2729_v15 = vshll.u32 %v2654_v62, 16  ;;  %v2733_v17 = vshrl.u32 %v2654_v62, 16  ;;  %v3069_v10 = vld [vmem:[#allocation2 + $0x38] sm:$0x1] }
  0xcc   : > { %v2708_v13 = vsel %vm4379_vm15, %v2703_v0, %v2707_v28  ;;  %3956 = vmatprep.mubr.msk.bf16.mxu1 %vm606_vm9, %v3694_v23  ;;  %v4648_v21 = vsel %vm4372_vm14, %v3739_v59, %v3118_v60  ;;  %v2722_v55 = vrot.slane %v2720_v9, 4  ;;  %v2739_v61 = vshll.u32 %v2655_v3, 16  ;;  %v3072_v56 = vld [vmem:[#allocation2 + $0x44] sm:$0x1]  ;;  %v2659_v0 = vld [vmem:[#allocation2 + $0x48] sm:$0xf] }
  0xcd   : > { %v2718_v20 = vsel %vm4379_vm15, %v2713_v6, %v2717_v1  ;;  %v4654_v29 = vsel %vm4372_vm14, %v3120_v7, %v3121_v2  ;;  %v2725_v30 = vrot.slane %v2723_v14, 5  ;;  %v2731_v23 = vrot.slane %v2729_v15, 5  ;;  %v2660_v2 = vld [vmem:[#allocation2 + $0x4c] sm:$0xf]  ;;  %v2661_v3 = vld [vmem:[#allocation2 + $0x50] sm:$0x1] }
  0xce   : > { %v4650_v27 = vcombine.low %v2708_v13, %v2718_v20  ;;  %v2735_v8 = vrot.slane %v2733_v17, 4  ;;  %v2741_v33 = vrot.slane %v2739_v61, 5  ;;  %v3740_v34 = vrot.slane %v3067_v11, 9 }
  0xcf   : > { %v3125_v35 = vrot.slane %v3068_v19, 5  ;;  %v2726_v36 = vor.u32 %v2725_v30, %v2722_v55  ;;  %v3128_v38 = vrot.slane %v3069_v10, 5  ;;  %v2744_v40 = vshrl.u32 %v2656_v50, 16  ;;  %v3075_v10 = vld [vmem:[#allocation2 + $0x50] sm:$0x1] }
  0xd0   : > { %v2747_v41 = vshll.u32 %v2656_v50, 16  ;;  %3971 = vmatmul.mubr.msk.bf16.gmra.mxu0 %vm606_vm9, %v4088_v46  ;;  %v2736_v42 = vor.u32 %v2735_v8, %v2731_v23  ;;  %v2753_v45 = vshll.u32 %v2657_v32, 16  ;;  %v2757_v28 = vshrl.u32 %v2657_v32, 16  ;;  %v3073_v46 = vld [vmem:[#allocation2 + $0x48] sm:$0xe] }
  0xd1   : > { %v4659_v37 = vsel %vm4372_vm14, %v3740_v34, %v3125_v35  ;;  %v3127_v43 = vrot.slane %v3125_v35, 4  ;;  %3974 = vmatprep.mubr.msk.bf16.mxu0 %vm606_vm9, %v4089_v26  ;;  %v2727_v48 = vrot.slane %v2726_v36, 4  ;;  %v2746_v49 = vrot.slane %v2744_v40, 4  ;;  %v2662_v32 = vld [vmem:[#allocation2 + $0x54] sm:$0xf] }
  0xd2   : > { %v2749_v22 = vrot.slane %v2747_v41, 5  ;;  %v2737_v53 = vrot.slane %v2736_v42, 4  ;;  %v2755_v16 = vrot.slane %v2753_v45, 5  ;;  %v2763_v54 = vshll.u32 %v2658_v39, 16  ;;  %v2663_v36 = vld [vmem:[#allocation2 + $0x58] sm:$0xf] }
  0xd3   : > { %v4664_v5 = vsel %vm4372_vm14, %v3127_v43, %v3128_v38  ;;  %3957 = vmatmul.mubr.msk.bf16.gmra.mxu1 %vm606_vm9, %v3695_v44  ;;  %v3748_v58 = vcombine.low %v4648_v21, %v4654_v29  ;;  %v2732_v59 = vsel %vm4379_vm15, %v2727_v48, %v2731_v23  ;;  %v2759_v62 = vrot.slane %v2757_v28, 4  ;;  %v2664_v42 = vld [vmem:[#allocation2 + $0x5c] sm:$0x1]  ;;  %v3076_v45 = vld [vmem:[#allocation2 + $0x54] sm:$0xe] }
  0xd4   : > { %v2750_v60 = vor.u32 %v2749_v22, %v2746_v49  ;;  %3980 = vmatprep.mubr.msk.bf16.mxu1 %vm606_vm9, %v3722_v4  ;;  %v2742_v1 = vsel %vm4379_vm15, %v2737_v53, %v2741_v33  ;;  %v3749_v24 = vcombine.low %v4659_v37, %v4664_v5  ;;  %v3741_v25 = vrot.slane %v3070_v47, 9  ;;  %v3074_v4 = vld [vmem:[#allocation2 + $0x4c] sm:$0xf]  ;;  %v3077_v28 = vld [vmem:[#allocation2 + $0x58] sm:$0xf] }
  0xd5   : > { %v3132_v44 = vrot.slane %v3071_v52, 5  ;;  %v2760_v7 = vor.u32 %v2759_v62, %v2755_v16  ;;  %v2765_v9 = vrot.slane %v2763_v54, 5  ;;  %v3135_v11 = vrot.slane %v3072_v56, 5  ;;  %v3078_v56 = vld [vmem:[#allocation2 + $0x5c] sm:$0x1] }
  0xd6   : > { %v2751_v6 = vrot.slane %v2750_v60, 4  ;;  %v3724_v13 = vcombine.low %v2732_v59, %v2742_v1  ;;  %v2768_v15 = vshrl.u32 %v2659_v0, 16  ;;  %v2771_v17 = vshll.u32 %v2659_v0, 16  ;;  %v2665_v62 = vld [vmem:[#allocation2 + $0x60] sm:$0xf] }
  0xd7   : > { %v3134_v14 = vrot.slane %v3132_v44, 4  ;;  %v2761_v19 = vrot.slane %v2760_v7, 4  ;;  %v4681_v20 = vsel %vm4372_vm14, %v3741_v25, %v3132_v44  ;;  %v2777_v55 = vshll.u32 %v2660_v2, 16  ;;  %v3079_v29 = vld [vmem:[#allocation2 + $0x60] sm:$0xe] }
  0xd8   : > { %v2781_v61 = vshrl.u32 %v2660_v2, 16  ;;  %3975 = vmatmul.mubr.msk.bf16.gmra.mxu0 %vm606_vm9, %v4090_v57  ;;  %v2770_v26 = vrot.slane %v2768_v15, 4  ;;  %v2773_v30 = vrot.slane %v2771_v17, 5  ;;  %v2787_v23 = vshll.u32 %v2661_v3, 16  ;;  %v2666_v2 = vld [vmem:[#allocation2 + $0x64] sm:$0xf] }
  0xd9   : > { %v4686_v50 = vsel %vm4372_vm14, %v3134_v14, %v3135_v11  ;;  %3998 = vmatprep.mubr.msk.bf16.mxu0 %vm606_vm9, %v3747_v63  ;;  %v2756_v8 = vsel %vm4379_vm15, %v2751_v6, %v2755_v16  ;;  %v2766_v33 = vsel %vm4379_vm15, %v2761_v19, %v2765_v9  ;;  %v2779_v34 = vrot.slane %v2777_v55, 5  ;;  %v2667_v14 = vld [vmem:[#allocation2 + $0x68] sm:$0x1] }
  0xda   : > { %v2783_v35 = vrot.slane %v2781_v61, 4  ;;  %v3750_v38 = vcombine.low %v4681_v20, %v4686_v50  ;;  %v2774_v39 = vor.u32 %v2773_v30, %v2770_v26  ;;  %v2789_v40 = vrot.slane %v2787_v23, 5  ;;  %v3080_v26 = vld [vmem:[#allocation2 + $0x64] sm:$0xf]  ;;  %v3081_v23 = vld [vmem:[#allocation2 + $0x68] sm:$0x1] }
  0xdb   : > { %v3742_v41 = vrot.slane %v3073_v46, 9  ;;  %3981 = vmatmul.mubr.msk.bf16.vlgmr.msra.gmra.mxu1 %vm606_vm9, %v4650_v27  ;;  %v3139_v12 = vrot.slane %v3074_v4, 5  ;;  %v3142_v63 = vrot.slane %v3075_v10, 5  ;;  %v2792_v43 = vshrl.u32 %v2662_v32, 16 }
  0xdc   : > { %v2784_v51 = vor.u32 %v2783_v35, %v2779_v34  ;;  %3984 = vmatprep.mubr.msk.bf16.mxu1 %vm606_vm9, %v3724_v13  ;;  %v2775_v47 = vrot.slane %v2774_v39, 4  ;;  %v2795_v48 = vshll.u32 %v2662_v32, 16  ;;  %v2801_v49 = vshll.u32 %v2663_v36, 16  ;;  %v2668_v32 = vld [vmem:[#allocation2 + $0x6c] sm:$0xf] }
  0xdd   : > { %v2805_v22 = vshrl.u32 %v2663_v36, 16  ;;  %v3725_v52 = vcombine.low %v2756_v8, %v2766_v33  ;;  %v3141_v16 = vrot.slane %v3139_v12, 4  ;;  %v2794_v54 = vrot.slane %v2792_v43, 4  ;;  %v2670_v43 = vld [vmem:[#allocation2 + $0x74] sm:$0x1] }
  0xde   : > { %v2785_v53 = vrot.slane %v2784_v51, 4  ;;  %v2780_v27 = vsel %vm4379_vm15, %v2775_v47, %v2779_v34  ;;  %v2797_v57 = vrot.slane %v2795_v48, 5  ;;  %v2803_v59 = vrot.slane %v2801_v49, 5 }
  0xdf   : > { %v2807_v60 = vrot.slane %v2805_v22, 4  ;;  %v3140_v1 = vsel %vm4372_vm14, %v3742_v41, %v3139_v12  ;;  %v3143_v25 = vsel %vm4372_vm14, %v3141_v16, %v3142_v63  ;;  %v2811_v44 = vshll.u32 %v2664_v42, 16  ;;  %v2669_v42 = vld [vmem:[#allocation2 + $0x70] sm:$0xf] }
  0xe0   : > { %v2790_v0 = vsel %vm4379_vm15, %v2785_v53, %v2789_v40  ;;  %3999 = vmatmul.mubr.msk.bf16.vlgmr.msra.gmra.mxu0 %vm606_vm9, %v3748_v58  ;;  %v2798_v6 = vor.u32 %v2797_v57, %v2794_v54  ;;  %v3743_v9 = vrot.slane %v3076_v45, 9  ;;  %v3146_v46 = vrot.slane %v3077_v28, 5  ;;  %v3082_v54 = vld [vmem:[#allocation2 + $0x6c] sm:$0xe]  ;;  %v3084_v57 = vld [vmem:[#allocation2 + $0x74] sm:$0x1] }
  0xe1   : > { %v3726_v3 = vcombine.low %v2780_v27, %v2790_v0  ;;  %v2808_v7 = vor.u32 %v2807_v60, %v2803_v59  ;;  %4002 = vmatprep.mubr.msk.bf16.mxu0 %vm606_vm9, %v3749_v24  ;;  %v2813_v11 = vrot.slane %v2811_v44, 5  ;;  %v3149_v13 = vrot.slane %v3078_v56, 5  ;;  %v3083_v27 = vld [vmem:[#allocation2 + $0x70] sm:$0xf] }
  0xe2   : > { %v2816_v15 = vshrl.u32 %v2665_v62, 16  ;;  %v2799_v17 = vrot.slane %v2798_v6, 4  ;;  %v2819_v19 = vshll.u32 %v2665_v62, 16  ;;  %v2825_v21 = vshll.u32 %v2666_v2, 16 }
  0xe3   : > { %v2809_v4 = vrot.slane %v2808_v7, 4  ;;  %3985 = vmatmul.mubr.msk.bf16.gmra.mxu1 %vm606_vm9, %v3725_v52  ;;  %v3751_v58 = vcombine.low %v3140_v1, %v3143_v25  ;;  %v3148_v55 = vrot.slane %v3146_v46, 4  ;;  %v2829_v10 = vshrl.u32 %v2666_v2, 16 }
  0xe4   : > { %v2818_v61 = vrot.slane %v2816_v15, 4  ;;  %3988 = vmatprep.mubr.msk.bf16.mxu1 %vm606_vm9, %v3726_v3  ;;  %v2804_v37 = vsel %vm4379_vm15, %v2799_v17, %v2803_v59  ;;  %v2821_v24 = vrot.slane %v2819_v19, 5  ;;  %v2827_v30 = vrot.slane %v2825_v21, 5 }
  0xe5   : > { %v2814_v5 = vsel %vm4379_vm15, %v2809_v4, %v2813_v11  ;;  %v3147_v33 = vsel %vm4372_vm14, %v3743_v9, %v3146_v46  ;;  %v2831_v34 = vrot.slane %v2829_v10, 4  ;;  %v2835_v35 = vshll.u32 %v2667_v14, 16 }
  0xe6   : > { %v3727_v8 = vcombine.low %v2804_v37, %v2814_v5  ;;  %v3150_v36 = vsel %vm4372_vm14, %v3148_v55, %v3149_v13  ;;  %v2822_v39 = vor.u32 %v2821_v24, %v2818_v61  ;;  %v3744_v40 = vrot.slane %v3079_v29, 9 }
  0xe7   : > { %v3153_v41 = vrot.slane %v3080_v26, 5  ;;  %v2832_v51 = vor.u32 %v2831_v34, %v2827_v30  ;;  %v2837_v12 = vrot.slane %v2835_v35, 5  ;;  %v3156_v63 = vrot.slane %v3081_v23, 5 }
  0xe8   : > { %v2840_v45 = vshrl.u32 %v2668_v32, 16  ;;  %4003 = vmatmul.mubr.msk.bf16.gmra.mxu0 %vm606_vm9, %v3750_v38  ;;  %v2823_v47 = vrot.slane %v2822_v39, 4  ;;  %v2843_v22 = vshll.u32 %v2668_v32, 16  ;;  %v2849_v53 = vshll.u32 %v2669_v42, 16 }
  0xe9   : > { %v3154_v48 = vsel %vm4372_vm14, %v3744_v40, %v3153_v41  ;;  %v3155_v49 = vrot.slane %v3153_v41, 4  ;;  %4006 = vmatprep.mubr.msk.bf16.mxu0 %vm606_vm9, %v3751_v58  ;;  %v2833_v28 = vrot.slane %v2832_v51, 4  ;;  %v2853_v16 = vshrl.u32 %v2669_v42, 16 }
  0xea   : > { %v2842_v52 = vrot.slane %v2840_v45, 4  ;;  %v2828_v56 = vsel %vm4379_vm15, %v2823_v47, %v2827_v30  ;;  %v2845_v50 = vrot.slane %v2843_v22, 5  ;;  %v2859_v38 = vshll.u32 %v2670_v43, 16 }
  0xeb   : > { %v3157_v20 = vsel %vm4372_vm14, %v3155_v49, %v3156_v63  ;;  %3989 = vmatmul.mubr.msk.bf16.gmra.mxu1 %vm606_vm9, %v3727_v8  ;;  %v3752_v59 = vcombine.low %v3147_v33, %v3150_v36  ;;  %v2838_v60 = vsel %vm4379_vm15, %v2833_v28, %v2837_v12  ;;  %v2851_v62 = vrot.slane %v2849_v53, 5 }
  0xec   : > { %v2855_v0 = vrot.slane %v2853_v16, 4  ;;  %v3728_v1 = vcombine.low %v2828_v56, %v2838_v60  ;;  %v3753_v25 = vcombine.low %v3154_v48, %v3157_v20  ;;  %v2846_v44 = vor.u32 %v2845_v50, %v2842_v52 }
  0xed   : > { %v2861_v2 = vrot.slane %v2859_v38, 5  ;;  %v3745_v6 = vrot.slane %v3082_v54, 9  ;;  %v3160_v7 = vrot.slane %v3083_v27, 5  ;;  %v3163_v9 = vrot.slane %v3084_v57, 5 }
  0xee   : > { %v2856_v3 = vor.u32 %v2855_v0, %v2851_v62  ;;  %3992 = vmatprep.mubr.msk.bf16.mxu1 %vm606_vm9, %v3728_v1  ;;  %v2847_v11 = vrot.slane %v2846_v44, 4 }
  0xef   : > { %v3162_v13 = vrot.slane %v3160_v7, 4  ;;  %v3161_v17 = vsel %vm4372_vm14, %v3745_v6, %v3160_v7 }
  0xf0   : > { %v2857_v46 = vrot.slane %v2856_v3, 4  ;;  %4007 = vmatmul.mubr.msk.bf16.gmra.mxu0 %vm606_vm9, %v3752_v59  ;;  %v2852_v14 = vsel %vm4379_vm15, %v2847_v11, %v2851_v62 }
  0xf1   : > { %4010 = vmatprep.mubr.msk.bf16.mxu0 %vm606_vm9, %v3753_v25  ;;  %v3164_v4 = vsel %vm4372_vm14, %v3162_v13, %v3163_v9 }
  0xf2   : > { %v2862_v15 = vsel %vm4379_vm15, %v2857_v46, %v2861_v2  ;;  %v3754_v21 = vcombine.low %v3161_v17, %v3164_v4 }
  0xf3   : > { %v3729_v19 = vcombine.low %v2852_v14, %v2862_v15 }
  0xf5   : > { %3993 = vmatmul.mubr.msk.bf16.gmra.mxu1 %vm606_vm9, %v3729_v19 }
  0xf8   : > { %4011 = vmatmul.mubr.msk.bf16.gmra.mxu0 %vm606_vm9, %v3754_v21 }
 0x11e   : > { %v3856_v29 = vpop.f32.mrf.mxu0  ;;  %v3864_v58 = vpop.f32.mrf.mxu1 }
 0x120   : > { %v669_v55 = vpop.f32.mrf.mxu0  ;;  %v701_v61 = vpop.f32.mrf.mxu1 }
 0x122   : > { %v3857_v10 = vpop.f32.mrf.mxu0  ;;  %v3865_v26 = vpop.f32.mrf.mxu1 }
 0x124   : > { %v672_v31 = vpop.f32.mrf.mxu0  ;;  %v704_v37 = vpop.f32.mrf.mxu1 }
 0x126   : > { %v3860_v5 = vpop.f32.mrf.mxu0  ;;  %v3868_v24 = vpop.f32.mrf.mxu1 }
 0x128   : > { %v685_v30 = vpop.f32.mrf.mxu0  ;;  %v717_v23 = vpop.f32.mrf.mxu1 }
 0x12a   : > { %v3861_v18 = vpop.f32.mrf.mxu0  ;;  %v3869_v32 = vpop.f32.mrf.mxu1 }
 0x12c   : > { %v688_v8 = vpop.f32.mrf.mxu0  ;;  %v720_v33 = vpop.f32.mrf.mxu1 }
 0x12e   : > { %v3892_v35 = vpop.f32.mrf.mxu0 }
 0x12f   : > { %v3874_v34 = vpop.f32.mrf.mxu1 }
 0x130   : > { %v1135_v36 = vadd.f32 %v3874_v34, %v3856_v29  ;;  %v1359_v40 = vpop.f32.mrf.mxu0 }
 0x131   : > { %v1054_v39 = vpop.f32.mrf.mxu1 }
 0x132   : > { %v4754_v41 = vadd.f32 %v3892_v35, %v1135_v36  ;;  %v1133_v42 = vadd.f32 %v1054_v39, %v669_v55  ;;  %v3893_v12 = vpop.f32.mrf.mxu0 }
 0x133   : > { %v3875_v51 = vpop.f32.mrf.mxu1 }
 0x134   : > { %v4756_v63 = vadd.f32 %v1359_v40, %v1133_v42  ;;  %v1136_v43 = vadd.f32 %v3875_v51, %v3857_v10  ;;  %v1362_v49 = vpop.f32.mrf.mxu0 }
 0x135   : > { %v1057_v45 = vpop.f32.mrf.mxu1 }
 0x136   : > { %v4758_v47 = vadd.f32 %v3893_v12, %v1136_v43  ;;  %v1134_v48 = vadd.f32 %v1057_v45, %v672_v31 }
 0x138   : > { %v4760_v22 = vadd.f32 %v1362_v49, %v1134_v48 }
 0x13b   : > { %v3896_v28 = vpop.f32.mrf.mxu0  ;;  %v3878_v52 = vpop.f32.mrf.mxu1 }
 0x13c   : > { %v1139_v53 = vadd.f32 %v3878_v52, %v3860_v5 }
 0x13d   : > { %v1375_v16 = vpop.f32.mrf.mxu0  ;;  %v1070_v54 = vpop.f32.mrf.mxu1 }
 0x13e   : > { %v4762_v56 = vadd.f32 %v3896_v28, %v1139_v53  ;;  %v1137_v20 = vadd.f32 %v1070_v54, %v685_v30 }
 0x13f   : > { %v3879_v50 = vpop.f32.mrf.mxu1  ;;  %v3897_v38 = vpop.f32.mrf.mxu0 }
 0x140   : > { %v4764_v27 = vadd.f32 %v1375_v16, %v1137_v20  ;;  %v1140_v57 = vadd.f32 %v3879_v50, %v3861_v18 }
 0x141   : > { %v1073_v59 = vpop.f32.mrf.mxu1  ;;  %v1378_v0 = vpop.f32.mrf.mxu0 }
 0x142   : > { %v4766_v60 = vadd.f32 %v3897_v38, %v1140_v57  ;;  %v1138_v62 = vadd.f32 %v1073_v59, %v688_v8 }
 0x144   : > { %v4768_v1 = vadd.f32 %v1378_v0, %v1138_v62 }
 0x147   : > { %v3882_v25 = vpop.f32.mrf.mxu1  ;;  %v3900_v2 = vpop.f32.mrf.mxu0 }
 0x148   : > { %v1143_v44 = vadd.f32 %v3882_v25, %v3864_v58 }
 0x149   : > { %v1086_v3 = vpop.f32.mrf.mxu1  ;;  %v1391_v9 = vpop.f32.mrf.mxu0 }
 0x14a   : > { %v4770_v6 = vadd.f32 %v3900_v2, %v1143_v44  ;;  %v1141_v7 = vadd.f32 %v1086_v3, %v701_v61 }
 0x14b   : > { %v3883_v11 = vpop.f32.mrf.mxu1  ;;  %v3901_v14 = vpop.f32.mrf.mxu0 }
 0x14c   : > { %v4772_v46 = vadd.f32 %v1391_v9, %v1141_v7  ;;  %v1144_v13 = vadd.f32 %v3883_v11, %v3865_v26 }
 0x14d   : > { %v1089_v15 = vpop.f32.mrf.mxu1  ;;  %v1394_v19 = vpop.f32.mrf.mxu0 }
 0x14e   : > { %v4774_v17 = vadd.f32 %v3901_v14, %v1144_v13  ;;  %v1142_v4 = vadd.f32 %v1089_v15, %v704_v37 }
 0x150   : > { %v4776_v21 = vadd.f32 %v1394_v19, %v1142_v4 }
 0x153   : > { %v3886_v29 = vpop.f32.mrf.mxu1 }
 0x154   : > { %v3904_v58 = vpop.f32.mrf.mxu0  ;;  %v1147_v55 = vadd.f32 %v3886_v29, %v3868_v24 }
 0x155   : > { %v1102_v10 = vpop.f32.mrf.mxu1 }
 0x156   : > { %v1407_v31 = vpop.f32.mrf.mxu0  ;;  %v4778_v5 = vadd.f32 %v3904_v58, %v1147_v55  ;;  %v1145_v61 = vadd.f32 %v1102_v10, %v717_v23 }
 0x157   : > { %v3887_v30 = vpop.f32.mrf.mxu1 }
 0x158   : > { %v3905_v18 = vpop.f32.mrf.mxu0  ;;  %v4780_v8 = vadd.f32 %v1407_v31, %v1145_v61  ;;  %v1148_v26 = vadd.f32 %v3887_v30, %v3869_v32 }
 0x159   : > { %v1105_v34 = vpop.f32.mrf.mxu1 }
 0x15a   : > { %v4782_v35 = vadd.f32 %v3905_v18, %v1148_v26  ;;  %v1146_v37 = vadd.f32 %v1105_v34, %v720_v33  ;;  %v1410_v36 = vpop.f32.mrf.mxu0 }
 0x15b   : > { %v3910_v39 = vpop.f32.mrf.mxu1 }
 0x15c   : > { %5015 = vst [vmem:[#allocation4_spill] sm:$0xff] %v4782_v35  ;;  %v4784_v40 = vadd.f32 %v1410_v36, %v1146_v37 }
 0x15d   : > { %v1589_v42 = vpop.f32.mrf.mxu1 }
 0x15e   : > { %5016 = vst [vmem:[#allocation5_spill] sm:$0xff] %v4784_v40  ;;  %v3928_v24 = vpop.f32.mrf.mxu0 }
 0x15f   : > { %v3911_v51 = vpop.f32.mrf.mxu1 }
 0x160   : > { %v2003_v12 = vpop.f32.mrf.mxu0 }
 0x161   : > { %v1592_v43 = vpop.f32.mrf.mxu1 }
 0x162   : > { %v3929_v45 = vpop.f32.mrf.mxu0 }
 0x163   : > { %v3914_v23 = vpop.f32.mrf.mxu1 }
 0x164   : > { %v4786_v48 = vpop.f32.mrf.mxu0 }
 0x165   : > { %v1605_v49 = vpop.f32.mrf.mxu1 }
 0x167   : > { %v4788_v28 = vpop.f32.mrf.mxu0  ;;  %v4790_v32 = vpop.f32.mrf.mxu1 }
 0x169   : > { %v4792_v52 = vpop.f32.mrf.mxu0  ;;  %v4794_v33 = vpop.f32.mrf.mxu1 }
 0x16b   : > { %v4796_v53 = vpop.f32.mrf.mxu0  ;;  %v4798_v16 = vpop.f32.mrf.mxu1 }
 0x16d   : > { %v4800_v54 = vpop.f32.mrf.mxu0  ;;  %v4802_v20 = vpop.f32.mrf.mxu1 }
 0x16f   : > { %v4804_v50 = vpop.f32.mrf.mxu1 }
 0x170   : > { %v4806_v38 = vpop.f32.mrf.mxu0 }
 0x171   : > { %v4808_v57 = vpop.f32.mrf.mxu1 }
 0x172   : > { %v4810_v59 = vpop.f32.mrf.mxu0 }
 0x173   : > { %v4812_v62 = vpop.f32.mrf.mxu1 }
 0x174   : > { %v4814_v0 = vpop.f32.mrf.mxu0 }
 0x175   : > { %v4816_v25 = vpop.f32.mrf.mxu1 }
 0x176   : > { %v4818_v44 = vpop.f32.mrf.mxu0 }
 0x177   : > { %v4820_v2 = vpop.f32.mrf.mxu1 }
 0x178   : > { %5017 = vst [vmem:[#allocation6_spill] sm:$0xff] %v4820_v2  ;;  %v4822_v3 = vpop.f32.mrf.mxu0 }
 0x179   : > { %v4824_v7 = vpop.f32.mrf.mxu1 }
 0x17a   : > { %5018 = vst [vmem:[#allocation7_spill] sm:$0xff] %v4824_v7  ;;  %v4826_v9 = vpop.f32.mrf.mxu0 }
 0x17b   : > { %5019 = vst [vmem:[#allocation8_spill] sm:$0xff] %v4826_v9  ;;  %v3946_v11 = vpop.f32.mrf.mxu1  ;;  %v1670_v9 = vadd.f32 %v3910_v39, %v4754_v41  ;;  %v1669_v41 = vadd.f32 %v1592_v43, %v4760_v22  ;;  %v1675_v22 = vadd.f32 %v4790_v32, %v4766_v60 }
 0x17c   : > { %v4828_v13 = vpop.f32.mrf.mxu0 }
 0x17d   : > { %5020 = vst [vmem:[#allocation9_spill] sm:$0xff] %v4828_v13  ;;  %v2305_v14 = vpop.f32.mrf.mxu1 }
 0x17e   : > { %v4830_v15 = vpop.f32.mrf.mxu0 }
 0x17f   : > { %5021 = vst [vmem:[#allocation10_spill] sm:$0xff] %v4830_v15  ;;  %v3947_v4 = vpop.f32.mrf.mxu1 }
 0x180   : > { %v3964_v19 = vpop.f32.mrf.mxu0 }
 0x181   : > { %v2308_v29 = vpop.f32.mrf.mxu1 }
 0x182   : > { %v2536_v58 = vpop.f32.mrf.mxu0 }
 0x183   : > { %v3950_v55 = vpop.f32.mrf.mxu1 }
 0x184   : > { %v3965_v10 = vpop.f32.mrf.mxu0 }
 0x185   : > { %v2321_v31 = vpop.f32.mrf.mxu1 }
 0x186   : > { %v4832_v61 = vpop.f32.mrf.mxu0 }
 0x187   : > { %v4834_v30 = vpop.f32.mrf.mxu1 }
 0x188   : > { %v4836_v18 = vpop.f32.mrf.mxu0 }
 0x189   : > { %v4838_v26 = vpop.f32.mrf.mxu1 }
 0x18a   : > { %5022 = vst [vmem:[#allocation11_spill] sm:$0xff] %v4838_v26  ;;  %v4840_v34 = vpop.f32.mrf.mxu0  ;;  %v1668_v26 = vadd.f32 %v1589_v42, %v4756_v63 }
 0x18b   : > { %5023 = vst [vmem:[#allocation12_spill] sm:$0xff] %v4840_v34  ;;  %v4842_v37 = vpop.f32.mrf.mxu1 }
 0x18c   : > { %5024 = vst [vmem:[#allocation13_spill] sm:$0xff] %v4842_v37  ;;  %v4844_v36 = vpop.f32.mrf.mxu0 }
 0x18d   : > { %5025 = vst [vmem:[#allocation14_spill] sm:$0xff] %v4844_v36  ;;  %v4846_v15 = vpop.f32.mrf.mxu1  ;;  %v2084_v36 = vadd.f32 %v3928_v24, %v1670_v9 }
 0x18e   : > { %5026 = vst [vmem:[#allocation15_spill] sm:$0xff] %v4846_v15  ;;  %v4848_v13 = vpop.f32.mrf.mxu0  ;;  %v1671_v15 = vadd.f32 %v3911_v51, %v4758_v47  ;;  %v1672_v47 = vadd.f32 %v1605_v49, %v4764_v27  ;;  %v2083_v51 = vadd.f32 %v4786_v48, %v1669_v41  ;;  %v1676_v27 = vadd.f32 %v4802_v20, %v4772_v46 }
 0x18f   : > { %5027 = vst [vmem:[#allocation16_spill] sm:$0xff] %v4848_v13  ;;  %v4850_v7 = vpop.f32.mrf.mxu1  ;;  %v2386_v39 = vadd.f32 %v3946_v11, %v2084_v36  ;;  %v1679_v48 = vadd.f32 %v4804_v50, %v4774_v17  ;;  %v1682_v46 = vadd.f32 %v4812_v62, %v4778_v5  ;;  %v1680_v5 = vadd.f32 %v4816_v25, %v4780_v8 }
 0x190   : > { %5028 = vst [vmem:[#allocation17_spill] sm:$0xff] %v4850_v7  ;;  %v4852_v40 = vpop.f32.mrf.mxu0  ;;  %v2085_v42 = vadd.f32 %v3929_v45, %v1671_v15  ;;  %v1673_v45 = vadd.f32 %v4794_v33, %v4768_v1  ;;  %v2086_v11 = vadd.f32 %v4792_v52, %v1672_v47  ;;  %v2385_v1 = vadd.f32 %v2308_v29, %v2083_v51 }
 0x191   : > { %5029 = vst [vmem:[#allocation18_spill] sm:$0xff] %v4852_v40  ;;  %v4855_v2 = vpop.f32.mrf.mxu1  ;;  %v2082_v40 = vadd.f32 %v2003_v12, %v1668_v26  ;;  %v2617_v12 = vadd.f32 %v3964_v19, %v2386_v39  ;;  %v2090_v52 = vadd.f32 %v4810_v59, %v1676_v27  ;;  %v5037_v36 = vld [vmem:[#allocation11_spill] sm:$0xff] }
 0x192   : > { %5030 = vst [vmem:[#allocation19_spill] sm:$0xff] %v4855_v2  ;;  %v4857_v35 = vpop.f32.mrf.mxu0  ;;  %v2387_v43 = vadd.f32 %v3947_v4, %v2085_v42  ;;  %v2087_v50 = vadd.f32 %v4800_v54, %v1673_v45  ;;  %v2388_v15 = vadd.f32 %v2321_v31, %v2086_v11 }
 0x193   : > { %5031 = vst [vmem:[#allocation20_spill] sm:$0xff] %v4857_v35  ;;  %v4860_v34 = vpop.f32.mrf.mxu1  ;;  %v1674_v35 = vadd.f32 %v3914_v23, %v4762_v56 }
 0x194   : > { %5032 = vst [vmem:[#allocation21_spill] sm:$0xff] %v4860_v34  ;;  %v4862_v37 = vpop.f32.mrf.mxu0  ;;  %v2384_v34 = vadd.f32 %v2305_v14, %v2082_v40  ;;  %v1678_v40 = vadd.f32 %v4798_v16, %v4770_v6  ;;  %v2089_v6 = vadd.f32 %v4796_v53, %v1675_v22  ;;  %v2618_v16 = vadd.f32 %v3965_v10, %v2387_v43  ;;  %v5035_v10 = vld [vmem:[#allocation6_spill] sm:$0xff] }
 0x195   : > { %5033 = vst [vmem:[#allocation22_spill] sm:$0xff] %v4862_v37  ;;  %v4865_v13 = vpop.f32.mrf.mxu1  ;;  %v2088_v56 = vadd.f32 %v4788_v28, %v1674_v35  ;;  %v1677_v35 = vadd.f32 %v4808_v57, %v4776_v21  ;;  %v4908_v57 = vld [vmem:[%s5003_s2] ss:$0 sm:$0xff]  ;;  %v2093_v53 = vadd.f32 %v4814_v0, %v1679_v48  ;;  %v5034_v0 = vld [vmem:[#allocation4_spill] sm:$0xff]  ;;  %v5038_v51 = vld [vmem:[#allocation14_spill] sm:$0xff] }
 0x196   : > { %v4867_v7 = vpop.f32.mrf.mxu0  ;;  %v2615_v60 = vadd.f32 %v2536_v58, %v2384_v34  ;;  %v2092_v14 = vadd.f32 %v4806_v38, %v1678_v40  ;;  %v2616_v38 = vadd.f32 %v4832_v61, %v2385_v1  ;;  %v2391_v29 = vadd.f32 %v4834_v30, %v2089_v6  ;;  %v5043_v1 = vld [vmem:[#allocation7_spill] sm:$0xff] }
 0x197   : > { %v4870_v2 = vpop.f32.mrf.mxu1  ;;  %v2390_v28 = vadd.f32 %v3950_v55, %v2088_v56  ;;  %v4914_v54 = vadd.f32 %v4818_v44, %v1677_v35  ;;  %v4920_v55 = vadd.f32 %v4822_v3, %v1682_v46  ;;  %v4924_v31 = vadd.f32 %v5035_v10, %v5034_v0  ;;  %v5036_v44 = vld [vmem:[#allocation12_spill] sm:$0xff]  ;;  %v5042_v35 = vld [vmem:[#allocation5_spill] sm:$0xff] }
 0x198   : > { %v4873_v63 = vpop.f32.mrf.mxu0  ;;  %v2619_v34 = vadd.f32 %v5036_v44, %v2388_v15  ;;  %v2389_v61 = vadd.f32 %v5037_v36, %v2087_v50  ;;  %v2622_v22 = vadd.f32 %v5038_v51, %v2391_v29 }
 0x199   : > { %v4875_v37 = vpop.f32.mrf.mxu1  ;;  %v2621_v59 = vadd.f32 %v4836_v18, %v2390_v28  ;;  %v1681_v28 = vadd.f32 %v5043_v1, %v5042_v35 }
 0x19a   : > { %v4878_v24 = vpop.f32.mrf.mxu0 }
 0x19b   : > { %v3982_v9 = vpop.f32.mrf.mxu1 }
 0x19c   : > { %v4890_v23 = vpop.f32.mrf.mxu0  ;;  %v3031_v49 = vadd.f32 %v3982_v9, %v2617_v12  ;;  %v5039_v12 = vld [vmem:[#allocation13_spill] sm:$0xff]  ;;  %v5040_v9 = vld [vmem:[#allocation15_spill] sm:$0xff] }
 0x19d   : > { %v2950_v32 = vpop.f32.mrf.mxu1  ;;  %v2394_v43 = vadd.f32 %v5039_v12, %v2092_v14  ;;  %v2392_v56 = vadd.f32 %v5040_v9, %v2090_v52  ;;  %v5044_v52 = vld [vmem:[#allocation16_spill] sm:$0xff] }
 0x19e   : > { %v4897_v33 = vpop.f32.mrf.mxu0  ;;  %v3029_v20 = vadd.f32 %v2950_v32, %v2615_v60  ;;  %v5041_v32 = vld [vmem:[#allocation8_spill] sm:$0xff]  ;;  %v2620_v15 = vadd.f32 %v5044_v52, %v2389_v61 }
 0x19f   : > { %v3983_v17 = vpop.f32.mrf.mxu1  ;;  %v2094_v11 = vadd.f32 %v5041_v32, %v1680_v5 }
 0x1a0   : > { %v4000_v21 = vpop.f32.mrf.mxu0  ;;  %v3032_v4 = vadd.f32 %v3983_v17, %v2618_v16 }
 0x1a1   : > { %v3333_v62 = vadd.f32 %v4000_v21, %v3031_v49  ;;  %v2953_v19 = vpop.f32.mrf.mxu1  ;;  %v5045_v21 = vld [vmem:[#allocation18_spill] sm:$0xff] }
 0x1a2   : > { %v3252_v58 = vpop.f32.mrf.mxu0  ;;  %v3030_v18 = vadd.f32 %v2953_v19, %v2616_v38 }
 0x1a3   : > { %v3388_v8 = vadd.f32 %v4908_v57, %v3333_v62  ;;  %v3331_v25 = vadd.f32 %v3252_v58, %v3029_v20  ;;  %v3986_v26 = vpop.f32.mrf.mxu1  ;;  %v2625_v62 = vadd.f32 %v5045_v21, %v2394_v43 }
 0x1a4   : > { %v4001_v41 = vpop.f32.mrf.mxu0  ;;  %v3035_v39 = vadd.f32 %v3986_v26, %v2621_v59  ;;  %v5047_v59 = vld [vmem:[#allocation20_spill] sm:$0xff] }
 0x1a5   : > { %vm3404_vm0 = vcmp.ge.f32.partialorder %v3388_v8, 0.0  ;;  %v3420_v30 = vmul.f32 0.1, %v3388_v8  ;;  %v3386_v3 = vadd.f32 %v4908_v57, %v3331_v25  ;;  %v3334_v42 = vadd.f32 %v4001_v41, %v3032_v4  ;;  %v2966_v47 = vpop.f32.mrf.mxu1  ;;  %v5046_v4 = vld [vmem:[#allocation17_spill] sm:$0xff] }
 0x1a6   : > { %v3255_v45 = vpop.f32.mrf.mxu0  ;;  %v3033_v40 = vadd.f32 %v2966_v47, %v2619_v34  ;;  %v2395_v19 = vadd.f32 %v5046_v4, %v2093_v53  ;;  %v2623_v29 = vadd.f32 %v5047_v59, %v2392_v56  ;;  %v5050_v56 = vld [vmem:[#allocation9_spill] sm:$0xff] }
 0x1a7   : > { %v3436_v27 = vsel %vm3404_vm0, %v3388_v8, %v3420_v30  ;;  %vm3402_vm1 = vcmp.ge.f32.partialorder %v3386_v3, 0.0  ;;  %v3418_v48 = vmul.f32 0.1, %v3386_v3  ;;  %v3389_v60 = vadd.f32 %v4908_v57, %v3334_v42  ;;  %v3987_v49 = vpop.f32.mrf.mxu1  ;;  %v5049_v30 = vld [vmem:[#allocation19_spill] sm:$0xff] }
 0x1a8   : > { %3452 = vst [vmem:[%s4239_s6 + $0x10] sm:$0xff] %v3436_v27  ;;  %v3332_v6 = vadd.f32 %v3255_v45, %v3030_v18  ;;  %v4004_v46 = vpop.f32.mrf.mxu0  ;;  %v3036_v16 = vadd.f32 %v3987_v49, %v2622_v22  ;;  %v5048_v18 = vld [vmem:[#allocation22_spill] sm:$0xff]  ;;  %v2097_v45 = vadd.f32 %v5050_v56, %v4924_v31 }
 0x1a9   : > { %v3434_v20 = vsel %vm3402_vm1, %v3386_v3, %v3418_v48  ;;  %vm3405_vm2 = vcmp.ge.f32.partialorder %v3389_v60, 0.0  ;;  %v3421_v17 = vmul.f32 0.1, %v3389_v60  ;;  %v3337_v50 = vadd.f32 %v4004_v46, %v3035_v39  ;;  %v2969_v14 = vpop.f32.mrf.mxu1 }
 0x1aa   : > { %3450 = vst [vmem:[%s4239_s6] sm:$0xff] %v3434_v20  ;;  %v3387_v5 = vadd.f32 %v4908_v57, %v3332_v6  ;;  %v3268_v38 = vpop.f32.mrf.mxu0  ;;  %v3034_v44 = vadd.f32 %v2969_v14, %v2620_v15  ;;  %v2626_v39 = vadd.f32 %v5048_v18, %v2395_v19  ;;  %v2393_v3 = vadd.f32 %v5049_v30, %v4914_v54  ;;  %v5052_v6 = vld [vmem:[#allocation10_spill] sm:$0xff] }
 0x1ab   : > { %v3437_v58 = vsel %vm3405_vm2, %v3389_v60, %v3421_v17  ;;  %v3392_v0 = vadd.f32 %v4908_v57, %v3337_v50  ;;  %v3335_v10 = vadd.f32 %v3268_v38, %v3033_v40  ;;  %v3990_v8 = vpop.f32.mrf.mxu1  ;;  %v5051_v40 = vld [vmem:[#allocation21_spill] sm:$0xff]  ;;  %v2095_v46 = vadd.f32 %v5052_v6, %v1681_v28 }
 0x1ac   : > { %3453 = vst [vmem:[%s4239_s6 + $0x18] sm:$0xff] %v3437_v58  ;;  %vm3403_vm3 = vcmp.ge.f32.partialorder %v3387_v5, 0.0  ;;  %v3419_v25 = vmul.f32 0.1, %v3387_v5  ;;  %v4005_v26 = vpop.f32.mrf.mxu0  ;;  %v3039_v34 = vadd.f32 %v3990_v8, %v2625_v62  ;;  %v2398_v27 = vadd.f32 %v5051_v40, %v4920_v55 }
 0x1ad   : > { %vm3408_vm4 = vcmp.ge.f32.partialorder %v3392_v0, 0.0  ;;  %v3424_v53 = vmul.f32 0.1, %v3392_v0  ;;  %v3390_v36 = vadd.f32 %v4908_v57, %v3335_v10  ;;  %v3338_v61 = vadd.f32 %v4005_v26, %v3036_v16  ;;  %v2982_v41 = vpop.f32.mrf.mxu1 }
 0x1ae   : > { %v3435_v42 = vsel %vm3403_vm3, %v3387_v5, %v3419_v25  ;;  %v3271_v47 = vpop.f32.mrf.mxu0  ;;  %v3037_v51 = vadd.f32 %v2982_v41, %v2623_v29  ;;  %v2624_v16 = vadd.f32 %v4867_v7, %v2393_v3  ;;  %v2396_v20 = vadd.f32 %v4865_v13, %v2094_v11 }
 0x1af   : > { %3451 = vst [vmem:[%s4239_s6 + $0x8] sm:$0xff] %v3435_v42  ;;  %v3440_v22 = vsel %vm3408_vm4, %v3392_v0, %v3424_v53  ;;  %vm3406_vm5 = vcmp.ge.f32.partialorder %v3390_v36, 0.0  ;;  %v3422_v12 = vmul.f32 0.1, %v3390_v36  ;;  %v3393_v43 = vadd.f32 %v4908_v57, %v3338_v61  ;;  %v3991_v9 = vpop.f32.mrf.mxu1 }
 0x1b0   : > { %3456 = vst [vmem:[%s4239_s6 + $0x30] sm:$0xff] %v3440_v22  ;;  %v3336_v48 = vadd.f32 %v3271_v47, %v3034_v44  ;;  %v4008_v54 = vpop.f32.mrf.mxu0  ;;  %v3040_v60 = vadd.f32 %v3991_v9, %v2626_v39  ;;  %v2399_v17 = vadd.f32 %v4870_v2, %v2097_v45  ;;  %v2629_v15 = vadd.f32 %v4873_v63, %v2398_v27 }
 0x1b1   : > { %v3438_v49 = vsel %vm3406_vm5, %v3390_v36, %v3422_v12  ;;  %vm3409_vm6 = vcmp.ge.f32.partialorder %v3393_v43, 0.0  ;;  %v3425_v32 = vmul.f32 0.1, %v3393_v43  ;;  %v3341_v35 = vadd.f32 %v4008_v54, %v3039_v34  ;;  %v2985_v1 = vpop.f32.mrf.mxu1 }
 0x1b2   : > { %3454 = vst [vmem:[%s4239_s6 + $0x20] sm:$0xff] %v3438_v49  ;;  %v3391_v31 = vadd.f32 %v4908_v57, %v3336_v48  ;;  %v3284_v55 = vpop.f32.mrf.mxu0  ;;  %v3038_v7 = vadd.f32 %v2985_v1, %v2624_v16  ;;  %v2627_v2 = vadd.f32 %v4878_v24, %v2396_v20  ;;  %v2397_v19 = vadd.f32 %v4875_v37, %v2095_v46 }
 0x1b3   : > { %v3441_v50 = vsel %vm3409_vm6, %v3393_v43, %v3425_v32  ;;  %v3396_v14 = vadd.f32 %v4908_v57, %v3341_v35  ;;  %v3339_v52 = vadd.f32 %v3284_v55, %v3037_v51  ;;  %v2630_v10 = vadd.f32 %v4890_v23, %v2399_v17 }
 0x1b4   : > { %3457 = vst [vmem:[%s4239_s6 + $0x38] sm:$0xff] %v3441_v50  ;;  %vm3407_vm7 = vcmp.ge.f32.partialorder %v3391_v31, 0.0  ;;  %v3423_v28 = vmul.f32 0.1, %v3391_v31  ;;  %v4009_v21 = vpop.f32.mrf.mxu0  ;;  %v2628_v53 = vadd.f32 %v4897_v33, %v2397_v19 }
 0x1b5   : > { %v3994_v62 = vpop.f32.mrf.mxu1  ;;  %vm3412_vm8 = vcmp.ge.f32.partialorder %v3396_v14, 0.0  ;;  %v3428_v13 = vmul.f32 0.1, %v3396_v14  ;;  %v3394_v11 = vadd.f32 %v4908_v57, %v3339_v52  ;;  %v3342_v4 = vadd.f32 %v4009_v21, %v3040_v60 }
 0x1b6   : > { %v3439_v5 = vsel %vm3407_vm7, %v3391_v31, %v3423_v28  ;;  %v3287_v38 = vpop.f32.mrf.mxu0  ;;  %v3043_v63 = vadd.f32 %v3994_v62, %v2629_v15 }
 0x1b7   : > { %v2998_v59 = vpop.f32.mrf.mxu1  ;;  %3455 = vst [vmem:[%s4239_s6 + $0x28] sm:$0xff] %v3439_v5  ;;  %v3444_v29 = vsel %vm3412_vm8, %v3396_v14, %v3428_v13  ;;  %vm3410_vm9 = vcmp.ge.f32.partialorder %v3394_v11, 0.0  ;;  %v3426_v58 = vmul.f32 0.1, %v3394_v11  ;;  %v3397_v0 = vadd.f32 %v4908_v57, %v3342_v4 }
 0x1b8   : > { %3460 = vst [vmem:[%s4239_s6 + $0x50] sm:$0xff] %v3444_v29  ;;  %v3340_v8 = vadd.f32 %v3287_v38, %v3038_v7  ;;  %v4012_v25 = vpop.f32.mrf.mxu0  ;;  %v3041_v24 = vadd.f32 %v2998_v59, %v2627_v2 }
 0x1b9   : > { %v3995_v26 = vpop.f32.mrf.mxu1  ;;  %v3442_v37 = vsel %vm3410_vm9, %v3394_v11, %v3426_v58  ;;  %vm3413_vm10 = vcmp.ge.f32.partialorder %v3397_v0, 0.0  ;;  %v3429_v44 = vmul.f32 0.1, %v3397_v0  ;;  %v3345_v34 = vadd.f32 %v4012_v25, %v3043_v63 }
 0x1ba   : > { %3458 = vst [vmem:[%s4239_s6 + $0x40] sm:$0xff] %v3442_v37  ;;  %v3395_v36 = vadd.f32 %v4908_v57, %v3340_v8  ;;  %v3300_v61 = vpop.f32.mrf.mxu0  ;;  %v3044_v41 = vadd.f32 %v3995_v26, %v2630_v10 }
 0x1bb   : > { %v3001_v18 = vpop.f32.mrf.mxu1  ;;  %v3445_v23 = vsel %vm3413_vm10, %v3397_v0, %v3429_v44  ;;  %v3400_v39 = vadd.f32 %v4908_v57, %v3345_v34  ;;  %v3343_v30 = vadd.f32 %v3300_v61, %v3041_v24 }
 0x1bc   : > { %3461 = vst [vmem:[%s4239_s6 + $0x58] sm:$0xff] %v3445_v23  ;;  %vm3411_vm11 = vcmp.ge.f32.partialorder %v3395_v36, 0.0  ;;  %v3427_v3 = vmul.f32 0.1, %v3395_v36  ;;  %v4013_v42 = vpop.f32.mrf.mxu0  ;;  %v3042_v47 = vadd.f32 %v3001_v18, %v2628_v53 }
 0x1bd   : > { %vm3416_vm12 = vcmp.ge.f32.partialorder %v3400_v39, 0.0  ;;  %v3432_v33 = vmul.f32 0.1, %v3400_v39  ;;  %v3398_v51 = vadd.f32 %v4908_v57, %v3343_v30  ;;  %v3346_v22 = vadd.f32 %v4013_v42, %v3044_v41 }
 0x1be   : > { %v3443_v12 = vsel %vm3411_vm11, %v3395_v36, %v3427_v3  ;;  %v3303_v45 = vpop.f32.mrf.mxu0 }
 0x1bf   : > { %3459 = vst [vmem:[%s4239_s6 + $0x48] sm:$0xff] %v3443_v12  ;;  %v3448_v43 = vsel %vm3416_vm12, %v3400_v39, %v3432_v33  ;;  %vm3414_vm13 = vcmp.ge.f32.partialorder %v3398_v51, 0.0  ;;  %v3430_v9 = vmul.f32 0.1, %v3398_v51  ;;  %v3401_v56 = vadd.f32 %v4908_v57, %v3346_v22 }
 0x1c0   : > { %3464 = vst [vmem:[%s4239_s6 + $0x70] sm:$0xff] %v3448_v43  ;;  %v3344_v40 = vadd.f32 %v3303_v45, %v3042_v47 }
 0x1c1   : > { %v3446_v27 = vsel %vm3414_vm13, %v3398_v51, %v3430_v9  ;;  %vm3417_vm14 = vcmp.ge.f32.partialorder %v3401_v56, 0.0  ;;  %v3433_v48 = vmul.f32 0.1, %v3401_v56 }
 0x1c2   : > { %3462 = vst [vmem:[%s4239_s6 + $0x60] sm:$0xff] %v3446_v27  ;;  %v3399_v54 = vadd.f32 %v4908_v57, %v3344_v40 }
 0x1c3   : > { %v3449_v60 = vsel %vm3417_vm14, %v3401_v56, %v3433_v48 }
 0x1c4   : > { %3465 = vst [vmem:[%s4239_s6 + $0x78] sm:$0xff] %v3449_v60  ;;  %vm3415_vm15 = vcmp.ge.f32.partialorder %v3399_v54, 0.0  ;;  %v3431_v49 = vmul.f32 0.1, %v3399_v54 }
 0x1c6   : > { %v3447_v32 = vsel %vm3415_vm15, %v3399_v54, %v3431_v49 }
 0x1c7   : > { %3463 = vst [vmem:[%s4239_s6 + $0x68] sm:$0xff] %v3447_v32 }
 0x1c8 PF: > { %s13_s16 = sadd.s32 1, %s4129_s16   ;;  %s5053_s12 = smov %s4121_s14 }
 0x1c9   : > { %p10_p9 = scmp.ge.s32.totalorder %s13_s16, 6   ;;  %s5054_s13 = smov %s4125_s15 }
 0x1ca   : > { %s5055_s14 = smov %s5058_s17  ;;  %s5056_s15 = smov %s5062_s18 }
 0x1cb   :  { %12 = sbr.rel (!%p10_p9) target bundleno = 3 (0x3), region = 84 }

</bundles_post_ra>
